<compile_context>
chip_gen: v5e
topology: v5e:2x2
jax: 0.10.0
libtpu: 0.0.40
codegen_flags: <defaults>
</compile_context>

<pallas_src>
import jax
import jax.numpy as jnp
from jax import lax
from jax.experimental import pallas as pl
from jax.experimental.pallas import tpu as pltpu

# ----------------------------- configuration --------------------------------
B = 2                      # batch
K_SHOTS = 2                # number of support images
IMG_H = IMG_W = 32
PATCH = 8                  # stand-in backbone output stride (ResNet-ish /8)
HF, WF = IMG_H // PATCH, IMG_W // PATCH
S_FEAT = HF * WF           # spatial positions at feature resolution
C_FEAT = 32                # feature channels (stand-in for layer3 channels)
C_AGN = 8                  # FTM stand-in output channels per branch
MU, TAU = 0.7, 0.5
BETA1, BETA2 = 0.5, 0.5
COS_EPS = 1e-8

K_PAD = 256                # patch contraction dim 3*8*8=192 zero-padded to 256
                           # (multiple of 128 -> no ragged v5e MXU pass)

# ---- bf16 MXU weight slab layout (row offsets; lane width _LW) --------------
_WB_EMBED = 0                         # [K_PAD, C_FEAT]   patch embed
_WB_L3 = _WB_EMBED + K_PAD            # [C_FEAT, C_FEAT]  layer3 projection
_WB_CAT = _WB_L3 + C_FEAT             # [C_FEAT, 2A + C]  w_ftm ++ w_fem_feat
_WB_FAGN = _WB_CAT + C_FEAT           # [C_AGN, C_FEAT]   FEM agn block
_WB_ROWS = _WB_FAGN + C_AGN           # 328
_LW = 2 * C_AGN + C_FEAT              # 48 lanes (widest block)

# ---- f32 bias / small-weight slab layout (row offsets) ----------------------
_WF_B_EMBED = 0                       # lanes [0, C)
_WF_B_L3 = 1                          # lanes [0, C)
_WF_B_CAT = 2                         # FTM bias in lanes [0, 2A); FEM part 0
_WF_W_MASK = 3                        # FEM mask-block weight row, lanes [0, C)
_WF_B_FEM = 4                         # lanes [0, C)
_WF_W_HEAD = 5                        # Head 1x1-conv weight row, lanes [0, C)
_WF_B_HEAD = 6                        # Head bias scalar at lane 0
_WF_W_PROTO = 8                       # FEM proto-block weight [C, C]
_WF_ROWS = _WF_W_PROTO + C_FEAT       # 40

_VMEM = pltpu.MemorySpace.VMEM


# ------------------------------ Pallas kernel --------------------------------
def _fgnet_fused_kernel(patch_ref, maskfg_ref, interp_ref, wb_ref, wf_ref,
                        protos_ref, agn_ref, pred_ref):
    """Whole FGNetPlus forward, fused and VMEM-resident (single block).

    patch_ref  : [(K+1)*B*S, K_PAD]  bf16  patch rows (supports then query)
    maskfg_ref : [K*B, H*W]          f32   binarized support fg masks
    interp_ref : [H*W, S]            f32   align-corners bilinear matrix
    wb_ref     : [_WB_ROWS, _LW]     bf16  packed MXU weights
    wf_ref     : [_WF_ROWS, _LW]     f32   packed biases / VPU weights
    protos_ref : [(4+K)*B, C]        f32   proto_e|proto_q|proto_s|proto_f|back
    agn_ref    : [B*S, 2A]           f32   agn_s | agn_q (lane-concatenated)
    pred_ref   : [B, S]              f32   fused prediction
    """
    f32, bf16 = jnp.float32, jnp.bfloat16
    C, A = C_FEAT, C_AGN
    S = interp_ref.shape[1]
    KB = maskfg_ref.shape[0]
    Bq = patch_ref.shape[0] // S - KB
    K = KB // Bq
    eps2 = COS_EPS * COS_EPS

    # ---- static slices of the two packed weight slabs (views, no DMA) ------
    w_embed = wb_ref[_WB_EMBED:_WB_EMBED + K_PAD, 0:C]       # bf16 [K_PAD, C]
    w_l3 = wb_ref[_WB_L3:_WB_L3 + C, 0:C]                    # bf16 [C, C]
    w_cat = wb_ref[_WB_CAT:_WB_CAT + C, :]                   # bf16 [C, 2A+C]
    w_fagn = wb_ref[_WB_FAGN:_WB_FAGN + A, 0:C]              # bf16 [A, C]

    b_embed = wf_ref[_WF_B_EMBED:_WF_B_EMBED + 1, 0:C]       # [1, C]
    b_l3 = wf_ref[_WF_B_L3:_WF_B_L3 + 1, 0:C]
    b_cat = wf_ref[_WF_B_CAT:_WF_B_CAT + 1, :]                # [1, 2A+C]
    w_mask = wf_ref[_WF_W_MASK:_WF_W_MASK + 1, 0:C]
    b_fem = wf_ref[_WF_B_FEM:_WF_B_FEM + 1, 0:C]
    w_head = wf_ref[_WF_W_HEAD:_WF_W_HEAD + 1, 0:C]
    b_head = wf_ref[_WF_B_HEAD:_WF_B_HEAD + 1, 0:1]           # [1, 1]
    w_proto = wf_ref[_WF_W_PROTO:_WF_W_PROTO + C, 0:C]        # [C, C] f32

    def pool(feat, mask):
        # masked_average_pooling: sum_s(f*m) / (sum_s m + 1e-5); exact divide
        # (kernel is launch-bound, exactness keeps >MU / >TAU thresholds safe).
        num = jnp.sum(feat * mask[:, :, None], axis=1)        # [N, C]
        den = jnp.sum(mask, axis=1, keepdims=True) + 1e-5     # [N, 1]
        return num / den

    def cosine(feat, proto):
        # F.cosine_similarity over channels.  Each norm is clamped to eps
        # separately (matches current torch); rsqrt runs on the EUP.
        num = jnp.sum(feat * proto[:, None, :], axis=2)       # [N, S]
        f_sq = jnp.sum(feat * feat, axis=2)                   # [N, S]
        p_sq = jnp.sum(proto * proto, axis=1, keepdims=True)  # [N, 1]
        inv = lax.rsqrt(jnp.maximum(f_sq, eps2)) * lax.rsqrt(jnp.maximum(p_sq, eps2))
        return num * inv

    # ---- backbone stand-in (layer0..layer3): two MXU dots over ALL images --
    h = jnp.dot(patch_ref[...], w_embed, preferred_element_type=f32)
    h = jnp.maximum(h + b_embed, 0.0)                         # layer0-2
    h = jnp.dot(h.astype(bf16), w_l3, preferred_element_type=f32)
    feat_all = jnp.maximum(h + b_l3, 0.0)                     # [(K+1)*B*S, C] f32

    n_sup = KB * S
    feat_s = feat_all[0:n_sup].reshape(KB, S, C)              # support feats
    feat_q2d = feat_all[n_sup:n_sup + Bq * S]                 # [B*S, C]
    feat_q = feat_q2d.reshape(Bq, S, C)                       # query feats

    # ---- support-mask bilinear resize (align_corners) as ONE MXU dot -------
    fgm = jnp.dot(maskfg_ref[...], interp_ref[...],
                  preferred_element_type=f32)                 # [K*B, S]
    bgm = 1.0 - fgm          # mask binarized before the linear resize

    # ---- per-shot fg/bg prototypes (all shots in one pass) ------------------
    # TODO(synk): get_back_protos is undefined upstream; stand-in = background
    # (mask == 0) masked average pooling per support shot.
    protos_fg = pool(feat_s, fgm)                             # [K*B, C]
    protos_bg = pool(feat_s, bgm)                             # [K*B, C]

    proto_s = protos_fg[0:Bq]
    for k in range(1, K):                                     # mean over shots
        proto_s = proto_s + protos_fg[k * Bq:(k + 1) * Bq]
    proto_s = proto_s * (1.0 / K)                             # [B, C]

    query_mask = cosine(feat_q, proto_s)                      # [B, S]
    proto_q = pool(feat_q, (query_mask > MU).astype(f32))     # [B, C]
    proto_f = BETA1 * proto_s + BETA2 * proto_q               # [B, C]
    query_mask2 = cosine(feat_q, proto_f)                     # [B, S]

    # ---- FTM + FEM feature block: ONE flattened 2-D MXU dot ----------------
    # TODO(synk): FTM is undefined upstream; stand-in = two 1x1-conv branches
    # (lane-concatenated with the FEM feature-block weight).
    fq_bf = feat_q2d.astype(bf16)
    y = jnp.dot(fq_bf, w_cat, preferred_element_type=f32) + b_cat  # [B*S, 2A+C]
    agn_all = jnp.maximum(y[:, 0:2 * A], 0.0)                 # FTM: relu(xW+b)
    agn_ref[...] = agn_all                                    # agn_s | agn_q
    t_feat = y[:, 2 * A:].reshape(Bq, S, C)                   # FEM feature block

    # ---- FEM stand-in on concat([feature_q, proto_f_exp, qmask2, agn_q]):
    # the concat + 1x1 conv is split by weight-row block (no concat built).
    # TODO(synk): FEM is undefined upstream; stand-in = 1x1 conv + ReLU
    # (feature/agn blocks on the bf16 MXU, proto/mask blocks in f32).
    t_agn = jnp.dot(agn_all[:, A:2 * A].astype(bf16), w_fagn,
                    preferred_element_type=f32).reshape(Bq, S, C)
    t_prot = jnp.dot(proto_f, w_proto, preferred_element_type=f32)    # [B, C]
    t_mask = query_mask2[:, :, None] * w_mask[None, :, :]             # [B, S, C]
    feat_enh = jnp.maximum(t_feat + t_prot[:, None, :] + t_mask + t_agn
                           + b_fem[None, :, :], 0.0)                  # [B, S, C]

    query_mask3 = cosine(feat_enh, proto_f)                   # [B, S]
    proto_e = pool(feat_enh, (query_mask3 > TAU).astype(f32))  # [B, C]
    pred_1 = cosine(feat_q, proto_e)                          # [B, S]

    # ---- Head stand-in (1-channel 1x1 conv) as a lane reduce ----------------
    # TODO(synk): Head is undefined upstream; stand-in = 1-channel 1x1 conv.
    pred_2 = jnp.sum(feat_enh * w_head[None, :, :], axis=2) + b_head  # [B, S]

    pred_ref[...] = 0.5 * pred_1 + 0.5 * pred_2

    # one stacked proto/back output slab
    protos_ref[...] = jnp.concatenate(
        [proto_e, proto_q, proto_s, proto_f, protos_bg], axis=0)


# ------------------------------ kernel wrapper --------------------------------
def _fgnet_fused_pallas(patches, mask_fg, params):
    kb = mask_fg.shape[0]
    b = patches.shape[0] // S_FEAT - kb
    out_shape = (
        jax.ShapeDtypeStruct(((4 + kb // b) * b, C_FEAT), jnp.float32),  # protos+back
        jax.ShapeDtypeStruct((b * S_FEAT, 2 * C_AGN), jnp.float32),      # agn_s|agn_q
        jax.ShapeDtypeStruct((b, S_FEAT), jnp.float32),                  # pred
    )
    # Single block, no grid: total VMEM footprint is ~170 KB, far below every
    # generation's limit; nothing to pipeline, so no vmem_limit / Buffered().
    # NOTE(v7x/v6e): if B / K_SHOTS / S_FEAT grow, add a leading episode grid
    # axis marked "parallel" so the second TensorCore / full MXU gets used.
    return pl.pallas_call(
        _fgnet_fused_kernel,
        out_shape=out_shape,
        in_specs=[pl.BlockSpec(memory_space=_VMEM)] * 5,
        out_specs=tuple(pl.BlockSpec(memory_space=_VMEM) for _ in out_shape),
    )(patches, mask_fg, params["interp"], params["w_bf16"], params["w_f32"])


# ------------------------------ JAX glue helpers ------------------------------
def _patchify(img_nchw):
    """[B,3,H,W] -> [B*S, K_PAD] bf16 patch rows.

    bf16 cast (halves the biggest HBM->VMEM DMA, fuses into the transpose)
    and zero-pad 192 -> 256 (clean multiple of 128 for the v5e MXU) happen
    here in the wrapper, not in the kernel."""
    bn, cin, _, _ = img_nchw.shape
    x = img_nchw.reshape(bn, cin, HF, PATCH, WF, PATCH)
    x = jnp.transpose(x, (0, 2, 4, 1, 3, 5))
    x = x.reshape(bn * S_FEAT, cin * PATCH * PATCH).astype(jnp.bfloat16)
    return jnp.pad(x, ((0, 0), (0, K_PAD - cin * PATCH * PATCH)))


def _interp_matrix_1d(n_in, n_out):
    """Align-corners bilinear interpolation matrix R: out = R @ in, [n_out,n_in]."""
    pos = (jnp.linspace(0.0, n_in - 1.0, n_out) if n_out > 1
           else jnp.zeros((n_out,), jnp.float32))
    lo = jnp.clip(jnp.floor(pos), 0, n_in - 1).astype(jnp.int32)
    hi = jnp.clip(lo + 1, 0, n_in - 1)
    frac = (pos - lo.astype(jnp.float32)).astype(jnp.float32)
    rows = jnp.arange(n_out)
    r = jnp.zeros((n_out, n_in), jnp.float32)
    r = r.at[rows, lo].add(1.0 - frac)
    r = r.at[rows, hi].add(frac)
    return r


def _bilinear_matrix(h_in, w_in, h_out, w_out):
    """Flattened separable bilinear (align_corners) resize matrix [H*W, h_out*w_out]."""
    ry = _interp_matrix_1d(h_in, h_out)        # [h_out, h_in]
    rx = _interp_matrix_1d(w_in, w_out)        # [w_out, w_in]
    return jnp.kron(ry.T, rx.T)                # flat_out = flat_in @ M


# ------------------------------ full forward ----------------------------------
def fgnet_plus_forward(params, img_s_list, mask_s_list, img_q, mask_q):
    del mask_q  # unused in the reference forward (eval path)
    k_shots = len(img_s_list)
    batch = img_q.shape[0]

    # all support shots + query as one bf16 patch-row slab
    patches = jnp.concatenate(
        [_patchify(im) for im in img_s_list] + [_patchify(img_q)], axis=0)

    # binarize support masks at full res; bilinear resize happens in-kernel
    mask_fg = jnp.concatenate(
        [(m == 1).astype(jnp.float32).reshape(batch, IMG_H * IMG_W)
         for m in mask_s_list], axis=0)                        # [K*B, H*W]

    # (training-only support-similarity branch skipped: module is in eval mode)

    protos, agn, pred = _fgnet_fused_pallas(patches, mask_fg, params)

    proto_e = protos[0:batch]
    proto_q = protos[batch:2 * batch]
    proto_s = protos[2 * batch:3 * batch][:, :, None, None]
    proto_f = protos[3 * batch:4 * batch][:, :, None, None]
    back = protos[4 * batch:]
    back_proto_list = [back[k * batch:(k + 1) * batch] for k in range(k_shots)]

    agn_s = jnp.transpose(agn[:, :C_AGN].reshape(batch, HF, WF, C_AGN),
                          (0, 3, 1, 2))
    agn_q = jnp.transpose(agn[:, C_AGN:].reshape(batch, HF, WF, C_AGN),
                          (0, 3, 1, 2))
    pred = pred.reshape(batch, 1, HF, WF)

    return (pred, proto_e, proto_q, proto_s, proto_f, agn_s, agn_q,
            back_proto_list)


# ------------------------------ parameter init --------------------------------
def init_params(key):
    ks = jax.random.split(key, 5)

    def lin(k, cin, cout):
        w = jax.random.normal(k, (cin, cout), jnp.float32) / jnp.sqrt(cin)
        return w, jnp.zeros((cout,), jnp.float32)

    w_embed, b_embed = lin(ks[0], 3 * PATCH * PATCH, C_FEAT)   # [192, 32]
    w_l3, b_l3 = lin(ks[1], C_FEAT, C_FEAT)
    w_ftm, b_ftm = lin(ks[2], C_FEAT, 2 * C_AGN)               # [32, 16]
    cat_ch = 2 * C_FEAT + 1 + C_AGN
    w_fem, b_fem = lin(ks[3], cat_ch, C_FEAT)                  # [73, 32]
    w_head, b_head = lin(ks[4], C_FEAT, 1)

    # FEM weight split by input block (the concat is never materialized)
    w_fem_feat = w_fem[:C_FEAT]
    w_fem_proto = w_fem[C_FEAT:2 * C_FEAT]
    w_fem_mask = w_fem[2 * C_FEAT:2 * C_FEAT + 1]
    w_fem_agn = w_fem[2 * C_FEAT + 1:]

    # ---- packed bf16 MXU weight slab [_WB_ROWS, _LW] ------------------------
    wb = jnp.zeros((_WB_ROWS, _LW), jnp.float32)
    wb = wb.at[_WB_EMBED:_WB_EMBED + 3 * PATCH * PATCH, 0:C_FEAT].set(w_embed)
    wb = wb.at[_WB_L3:_WB_L3 + C_FEAT, 0:C_FEAT].set(w_l3)
    wb = wb.at[_WB_CAT:_WB_CAT + C_FEAT, :].set(
        jnp.concatenate([w_ftm, w_fem_feat], axis=1))          # w_ftm ++ w_femf
    wb = wb.at[_WB_FAGN:_WB_FAGN + C_AGN, 0:C_FEAT].set(w_fem_agn)

    # ---- packed f32 bias / VPU-weight slab [_WF_ROWS, _LW] ------------------
    wf = jnp.zeros((_WF_ROWS, _LW), jnp.float32)
    wf = wf.at[_WF_B_EMBED, 0:C_FEAT].set(b_embed)
    wf = wf.at[_WF_B_L3, 0:C_FEAT].set(b_l3)
    wf = wf.at[_WF_B_CAT, 0:2 * C_AGN].set(b_ftm)      # FEM-feature bias stays 0
    wf = wf.at[_WF_W_MASK, 0:C_FEAT].set(w_fem_mask[0])
    wf = wf.at[_WF_B_FEM, 0:C_FEAT].set(b_fem)
    wf = wf.at[_WF_W_HEAD, 0:C_FEAT].set(w_head[:, 0])
    wf = wf.at[_WF_B_HEAD, 0].set(b_head[0])           # Head bias scalar
    wf = wf.at[_WF_W_PROTO:_WF_W_PROTO + C_FEAT, 0:C_FEAT].set(w_fem_proto)

    return {
        "w_bf16": wb.astype(jnp.bfloat16),
        "w_f32": wf,
        "interp": _bilinear_matrix(IMG_H, IMG_W, HF, WF),      # [H*W, S] f32
    }


# ----------------------------------- main -------------------------------------
if __name__ == "__main__":
    key = jax.random.PRNGKey(0)
    k_param, k_s, k_ms, k_q, k_mq = jax.random.split(key, 5)

    params = init_params(k_param)

    img_s_list = [
        jax.random.normal(jax.random.fold_in(k_s, i), (B, 3, IMG_H, IMG_W),
                          jnp.float32)
        for i in range(K_SHOTS)
    ]
    mask_s_list = [
        (jax.random.uniform(jax.random.fold_in(k_ms, i), (B, IMG_H, IMG_W))
         > 0.5).astype(jnp.float32)
        for i in range(K_SHOTS)
    ]
    img_q = jax.random.normal(k_q, (B, 3, IMG_H, IMG_W), jnp.float32)
    mask_q = (jax.random.uniform(k_mq, (B, IMG_H, IMG_W)) > 0.5
              ).astype(jnp.float32)

    forward = jax.jit(fgnet_plus_forward)
    outputs = forward(params, img_s_list, mask_s_list, img_q, mask_q)
    jax.block_until_ready(jax.tree_util.tree_leaves(outputs))

    pred = outputs[0]
    assert pred.shape == (B, 1, IMG_H // PATCH, IMG_W // PATCH)
    assert outputs[1].shape == (B, C_FEAT)                  # proto_e
    assert outputs[5].shape == (B, C_AGN, HF, WF)           # agn_s
    assert len(outputs[7]) == K_SHOTS                       # back_proto_list
    print("KERNEL_OK")
</pallas_src>

<mosaic_0001>
module attributes {stable_mosaic.version = 11 : i64} {
  func.func @_fgnet_fused_kernel(%arg0: memref<96x256xbf16, #tpu.memory_space<vmem>>, %arg1: memref<4x1024xf32, #tpu.memory_space<vmem>>, %arg2: memref<1024x16xf32, #tpu.memory_space<vmem>>, %arg3: memref<328x48xbf16, #tpu.memory_space<vmem>>, %arg4: memref<40x48xf32, #tpu.memory_space<vmem>>, %arg5: memref<12x32xf32, #tpu.memory_space<vmem>>, %arg6: memref<32x16xf32, #tpu.memory_space<vmem>>, %arg7: memref<2x16xf32, #tpu.memory_space<vmem>>) attributes {dimension_semantics = [], scalar_prefetch = 0 : i64, scratch_operands = 0 : i64, tpu.core_type = #tpu.core_type<tc>} {
    %c0 = arith.constant 0 : index
    %c0_0 = arith.constant 0 : index
    %0 = vector.load %arg3[%c0, %c0_0] : memref<328x48xbf16, #tpu.memory_space<vmem>>, vector<256x32xbf16>
    %c256 = arith.constant 256 : index
    %c0_1 = arith.constant 0 : index
    %1 = vector.load %arg3[%c256, %c0_1] : memref<328x48xbf16, #tpu.memory_space<vmem>>, vector<32x32xbf16>
    %c288 = arith.constant 288 : index
    %c0_2 = arith.constant 0 : index
    %2 = vector.load %arg3[%c288, %c0_2] : memref<328x48xbf16, #tpu.memory_space<vmem>>, vector<32x48xbf16>
    %c320 = arith.constant 320 : index
    %c0_3 = arith.constant 0 : index
    %3 = vector.load %arg3[%c320, %c0_3] : memref<328x48xbf16, #tpu.memory_space<vmem>>, vector<8x32xbf16>
    %c0_4 = arith.constant 0 : index
    %c0_5 = arith.constant 0 : index
    %4 = vector.load %arg4[%c0_4, %c0_5] : memref<40x48xf32, #tpu.memory_space<vmem>>, vector<1x32xf32>
    %c1 = arith.constant 1 : index
    %c0_6 = arith.constant 0 : index
    %5 = vector.load %arg4[%c1, %c0_6] : memref<40x48xf32, #tpu.memory_space<vmem>>, vector<1x32xf32>
    %c2 = arith.constant 2 : index
    %c0_7 = arith.constant 0 : index
    %6 = vector.load %arg4[%c2, %c0_7] : memref<40x48xf32, #tpu.memory_space<vmem>>, vector<1x48xf32>
    %c3 = arith.constant 3 : index
    %c0_8 = arith.constant 0 : index
    %7 = vector.load %arg4[%c3, %c0_8] : memref<40x48xf32, #tpu.memory_space<vmem>>, vector<1x32xf32>
    %c4 = arith.constant 4 : index
    %c0_9 = arith.constant 0 : index
    %8 = vector.load %arg4[%c4, %c0_9] : memref<40x48xf32, #tpu.memory_space<vmem>>, vector<1x32xf32>
    %c5 = arith.constant 5 : index
    %c0_10 = arith.constant 0 : index
    %9 = vector.load %arg4[%c5, %c0_10] : memref<40x48xf32, #tpu.memory_space<vmem>>, vector<1x32xf32>
    %c6 = arith.constant 6 : index
    %c0_11 = arith.constant 0 : index
    %10 = vector.load %arg4[%c6, %c0_11] : memref<40x48xf32, #tpu.memory_space<vmem>>, vector<1x1xf32>
    %c8 = arith.constant 8 : index
    %c0_12 = arith.constant 0 : index
    %11 = vector.load %arg4[%c8, %c0_12] : memref<40x48xf32, #tpu.memory_space<vmem>>, vector<32x32xf32>
    %c0_13 = arith.constant 0 : index
    %c0_14 = arith.constant 0 : index
    %12 = vector.load %arg0[%c0_13, %c0_14] : memref<96x256xbf16, #tpu.memory_space<vmem>>, vector<96x256xbf16>
    %cst = arith.constant dense<0.000000e+00> : vector<96x32xf32>
    %13 = tpu.matmul %12, %0, %cst {dimension_numbers = #tpu.dot_dimension_numbers<[1], [0], [0], [1], [0, 0, 1, 1], [], []>} : vector<96x256xbf16>, vector<256x32xbf16>, vector<96x32xf32> -> vector<96x32xf32>
    %14 = vector.broadcast %4 : vector<1x32xf32> to vector<96x32xf32>
    %15 = arith.addf %13, %14 : vector<96x32xf32>
    %cst_15 = arith.constant 0.000000e+00 : f32
    %16 = vector.broadcast %cst_15 : f32 to vector<96x32xf32>
    %17 = arith.maximumf %15, %16 : vector<96x32xf32>
    %18 = arith.truncf %17 : vector<96x32xf32> to vector<96x32xbf16>
    %cst_16 = arith.constant dense<0.000000e+00> : vector<96x32xf32>
    %19 = tpu.matmul %18, %1, %cst_16 {dimension_numbers = #tpu.dot_dimension_numbers<[1], [0], [0], [1], [0, 0, 1, 1], [], []>} : vector<96x32xbf16>, vector<32x32xbf16>, vector<96x32xf32> -> vector<96x32xf32>
    %20 = vector.broadcast %5 : vector<1x32xf32> to vector<96x32xf32>
    %21 = arith.addf %19, %20 : vector<96x32xf32>
    %cst_17 = arith.constant 0.000000e+00 : f32
    %22 = vector.broadcast %cst_17 : f32 to vector<96x32xf32>
    %23 = arith.maximumf %21, %22 : vector<96x32xf32>
    %24 = vector.extract_strided_slice %23 {offsets = [0, 0], sizes = [64, 32], strides = [1, 1]} : vector<96x32xf32> to vector<64x32xf32>
    %25 = vector.shape_cast %24 : vector<64x32xf32> to vector<4x16x32xf32>
    %26 = vector.extract_strided_slice %23 {offsets = [64, 0], sizes = [32, 32], strides = [1, 1]} : vector<96x32xf32> to vector<32x32xf32>
    %27 = vector.shape_cast %26 : vector<32x32xf32> to vector<2x16x32xf32>
    %c0_18 = arith.constant 0 : index
    %c0_19 = arith.constant 0 : index
    %28 = vector.load %arg1[%c0_18, %c0_19] : memref<4x1024xf32, #tpu.memory_space<vmem>>, vector<4x1024xf32>
    %c0_20 = arith.constant 0 : index
    %c0_21 = arith.constant 0 : index
    %29 = vector.load %arg2[%c0_20, %c0_21] : memref<1024x16xf32, #tpu.memory_space<vmem>>, vector<1024x16xf32>
    %cst_22 = arith.constant dense<0.000000e+00> : vector<4x16xf32>
    %30 = tpu.matmul %28, %29, %cst_22 {dimension_numbers = #tpu.dot_dimension_numbers<[1], [0], [0], [1], [0, 0, 1, 1], [], []>} : vector<4x1024xf32>, vector<1024x16xf32>, vector<4x16xf32> -> vector<4x16xf32>
    %cst_23 = arith.constant 1.000000e+00 : f32
    %31 = vector.broadcast %cst_23 : f32 to vector<4x16xf32>
    %32 = arith.subf %31, %30 : vector<4x16xf32>
    %33 = vector.shape_cast %30 : vector<4x16xf32> to vector<4x16x1xf32>
    %34 = vector.broadcast %33 : vector<4x16x1xf32> to vector<4x16x32xf32>
    %35 = arith.mulf %25, %34 : vector<4x16x32xf32>
    %cst_24 = arith.constant dense<0.000000e+00> : vector<4x32xf32>
    %36 = vector.multi_reduction <add>, %35, %cst_24 [1] : vector<4x16x32xf32> to vector<4x32xf32>
    %cst_25 = arith.constant dense<0.000000e+00> : vector<4xf32>
    %37 = vector.multi_reduction <add>, %30, %cst_25 [1] : vector<4x16xf32> to vector<4xf32>
    %38 = vector.shape_cast %37 : vector<4xf32> to vector<4x1xf32>
    %cst_26 = arith.constant 9.99999974E-6 : f32
    %39 = vector.broadcast %cst_26 : f32 to vector<4x1xf32>
    %40 = arith.addf %38, %39 : vector<4x1xf32>
    %41 = vector.broadcast %40 : vector<4x1xf32> to vector<4x32xf32>
    %42 = arith.divf %36, %41 : vector<4x32xf32>
    %43 = vector.shape_cast %32 : vector<4x16xf32> to vector<4x16x1xf32>
    %44 = vector.broadcast %43 : vector<4x16x1xf32> to vector<4x16x32xf32>
    %45 = arith.mulf %25, %44 : vector<4x16x32xf32>
    %cst_27 = arith.constant dense<0.000000e+00> : vector<4x32xf32>
    %46 = vector.multi_reduction <add>, %45, %cst_27 [1] : vector<4x16x32xf32> to vector<4x32xf32>
    %cst_28 = arith.constant dense<0.000000e+00> : vector<4xf32>
    %47 = vector.multi_reduction <add>, %32, %cst_28 [1] : vector<4x16xf32> to vector<4xf32>
    %48 = vector.shape_cast %47 : vector<4xf32> to vector<4x1xf32>
    %cst_29 = arith.constant 9.99999974E-6 : f32
    %49 = vector.broadcast %cst_29 : f32 to vector<4x1xf32>
    %50 = arith.addf %48, %49 : vector<4x1xf32>
    %51 = vector.broadcast %50 : vector<4x1xf32> to vector<4x32xf32>
    %52 = arith.divf %46, %51 : vector<4x32xf32>
    %53 = vector.extract_strided_slice %42 {offsets = [0, 0], sizes = [2, 32], strides = [1, 1]} : vector<4x32xf32> to vector<2x32xf32>
    %54 = vector.extract_strided_slice %42 {offsets = [2, 0], sizes = [2, 32], strides = [1, 1]} : vector<4x32xf32> to vector<2x32xf32>
    %55 = arith.addf %53, %54 : vector<2x32xf32>
    %cst_30 = arith.constant 5.000000e-01 : f32
    %56 = vector.broadcast %cst_30 : f32 to vector<2x32xf32>
    %57 = arith.mulf %55, %56 : vector<2x32xf32>
    %58 = vector.shape_cast %57 : vector<2x32xf32> to vector<2x1x32xf32>
    %59 = vector.broadcast %58 : vector<2x1x32xf32> to vector<2x16x32xf32>
    %60 = arith.mulf %27, %59 : vector<2x16x32xf32>
    %cst_31 = arith.constant dense<0.000000e+00> : vector<2x16xf32>
    %61 = vector.multi_reduction <add>, %60, %cst_31 [2] : vector<2x16x32xf32> to vector<2x16xf32>
    %62 = arith.mulf %27, %27 : vector<2x16x32xf32>
    %cst_32 = arith.constant dense<0.000000e+00> : vector<2x16xf32>
    %63 = vector.multi_reduction <add>, %62, %cst_32 [2] : vector<2x16x32xf32> to vector<2x16xf32>
    %64 = arith.mulf %57, %57 : vector<2x32xf32>
    %cst_33 = arith.constant dense<0.000000e+00> : vector<2xf32>
    %65 = vector.multi_reduction <add>, %64, %cst_33 [1] : vector<2x32xf32> to vector<2xf32>
    %66 = vector.shape_cast %65 : vector<2xf32> to vector<2x1xf32>
    %cst_34 = arith.constant 1.000000e-16 : f32
    %67 = vector.broadcast %cst_34 : f32 to vector<2x16xf32>
    %68 = arith.maximumf %63, %67 : vector<2x16xf32>
    %69 = math.rsqrt %68 : vector<2x16xf32>
    %cst_35 = arith.constant 1.000000e-16 : f32
    %70 = vector.broadcast %cst_35 : f32 to vector<2x1xf32>
    %71 = arith.maximumf %66, %70 : vector<2x1xf32>
    %72 = math.rsqrt %71 : vector<2x1xf32>
    %73 = vector.broadcast %72 : vector<2x1xf32> to vector<2x16xf32>
    %74 = arith.mulf %69, %73 : vector<2x16xf32>
    %75 = arith.mulf %61, %74 : vector<2x16xf32>
    %cst_36 = arith.constant 0.699999988 : f32
    %76 = vector.broadcast %cst_36 : f32 to vector<2x16xf32>
    %77 = arith.cmpf ogt, %75, %76 : vector<2x16xf32>
    %78 = arith.extui %77 : vector<2x16xi1> to vector<2x16xi32>
    %79 = arith.sitofp %78 : vector<2x16xi32> to vector<2x16xf32>
    %80 = vector.shape_cast %79 : vector<2x16xf32> to vector<2x16x1xf32>
    %81 = vector.broadcast %80 : vector<2x16x1xf32> to vector<2x16x32xf32>
    %82 = arith.mulf %27, %81 : vector<2x16x32xf32>
    %cst_37 = arith.constant dense<0.000000e+00> : vector<2x32xf32>
    %83 = vector.multi_reduction <add>, %82, %cst_37 [1] : vector<2x16x32xf32> to vector<2x32xf32>
    %cst_38 = arith.constant dense<0.000000e+00> : vector<2xf32>
    %84 = vector.multi_reduction <add>, %79, %cst_38 [1] : vector<2x16xf32> to vector<2xf32>
    %85 = vector.shape_cast %84 : vector<2xf32> to vector<2x1xf32>
    %cst_39 = arith.constant 9.99999974E-6 : f32
    %86 = vector.broadcast %cst_39 : f32 to vector<2x1xf32>
    %87 = arith.addf %85, %86 : vector<2x1xf32>
    %88 = vector.broadcast %87 : vector<2x1xf32> to vector<2x32xf32>
    %89 = arith.divf %83, %88 : vector<2x32xf32>
    %cst_40 = arith.constant 5.000000e-01 : f32
    %90 = vector.broadcast %cst_40 : f32 to vector<2x32xf32>
    %91 = arith.mulf %90, %57 : vector<2x32xf32>
    %cst_41 = arith.constant 5.000000e-01 : f32
    %92 = vector.broadcast %cst_41 : f32 to vector<2x32xf32>
    %93 = arith.mulf %92, %89 : vector<2x32xf32>
    %94 = arith.addf %91, %93 : vector<2x32xf32>
    %95 = vector.shape_cast %94 : vector<2x32xf32> to vector<2x1x32xf32>
    %96 = vector.broadcast %95 : vector<2x1x32xf32> to vector<2x16x32xf32>
    %97 = arith.mulf %27, %96 : vector<2x16x32xf32>
    %cst_42 = arith.constant dense<0.000000e+00> : vector<2x16xf32>
    %98 = vector.multi_reduction <add>, %97, %cst_42 [2] : vector<2x16x32xf32> to vector<2x16xf32>
    %99 = arith.mulf %27, %27 : vector<2x16x32xf32>
    %cst_43 = arith.constant dense<0.000000e+00> : vector<2x16xf32>
    %100 = vector.multi_reduction <add>, %99, %cst_43 [2] : vector<2x16x32xf32> to vector<2x16xf32>
    %101 = arith.mulf %94, %94 : vector<2x32xf32>
    %cst_44 = arith.constant dense<0.000000e+00> : vector<2xf32>
    %102 = vector.multi_reduction <add>, %101, %cst_44 [1] : vector<2x32xf32> to vector<2xf32>
    %103 = vector.shape_cast %102 : vector<2xf32> to vector<2x1xf32>
    %cst_45 = arith.constant 1.000000e-16 : f32
    %104 = vector.broadcast %cst_45 : f32 to vector<2x16xf32>
    %105 = arith.maximumf %100, %104 : vector<2x16xf32>
    %106 = math.rsqrt %105 : vector<2x16xf32>
    %cst_46 = arith.constant 1.000000e-16 : f32
    %107 = vector.broadcast %cst_46 : f32 to vector<2x1xf32>
    %108 = arith.maximumf %103, %107 : vector<2x1xf32>
    %109 = math.rsqrt %108 : vector<2x1xf32>
    %110 = vector.broadcast %109 : vector<2x1xf32> to vector<2x16xf32>
    %111 = arith.mulf %106, %110 : vector<2x16xf32>
    %112 = arith.mulf %98, %111 : vector<2x16xf32>
    %113 = arith.truncf %26 : vector<32x32xf32> to vector<32x32xbf16>
    %cst_47 = arith.constant dense<0.000000e+00> : vector<32x48xf32>
    %114 = tpu.matmul %113, %2, %cst_47 {dimension_numbers = #tpu.dot_dimension_numbers<[1], [0], [0], [1], [0, 0, 1, 1], [], []>} : vector<32x32xbf16>, vector<32x48xbf16>, vector<32x48xf32> -> vector<32x48xf32>
    %115 = vector.broadcast %6 : vector<1x48xf32> to vector<32x48xf32>
    %116 = arith.addf %114, %115 : vector<32x48xf32>
    %117 = vector.extract_strided_slice %116 {offsets = [0, 0], sizes = [32, 16], strides = [1, 1]} : vector<32x48xf32> to vector<32x16xf32>
    %cst_48 = arith.constant 0.000000e+00 : f32
    %118 = vector.broadcast %cst_48 : f32 to vector<32x16xf32>
    %119 = arith.maximumf %117, %118 : vector<32x16xf32>
    %c0_49 = arith.constant 0 : index
    %c0_50 = arith.constant 0 : index
    %120 = vector.load %arg6[%c0_49, %c0_50] : memref<32x16xf32, #tpu.memory_space<vmem>>, vector<32x16xf32>
    tpu.vector_store %arg6[%c0_49, %c0_50], %119 {strides = array<i32>} : memref<32x16xf32, #tpu.memory_space<vmem>>, vector<32x16xf32>,
    %121 = vector.extract_strided_slice %116 {offsets = [0, 16], sizes = [32, 32], strides = [1, 1]} : vector<32x48xf32> to vector<32x32xf32>
    %122 = vector.shape_cast %121 : vector<32x32xf32> to vector<2x16x32xf32>
    %123 = vector.extract_strided_slice %119 {offsets = [0, 8], sizes = [32, 8], strides = [1, 1]} : vector<32x16xf32> to vector<32x8xf32>
    %124 = arith.truncf %123 : vector<32x8xf32> to vector<32x8xbf16>
    %cst_51 = arith.constant dense<0.000000e+00> : vector<32x32xf32>
    %125 = tpu.matmul %124, %3, %cst_51 {dimension_numbers = #tpu.dot_dimension_numbers<[1], [0], [0], [1], [0, 0, 1, 1], [], []>} : vector<32x8xbf16>, vector<8x32xbf16>, vector<32x32xf32> -> vector<32x32xf32>
    %126 = vector.shape_cast %125 : vector<32x32xf32> to vector<2x16x32xf32>
    %cst_52 = arith.constant dense<0.000000e+00> : vector<2x32xf32>
    %127 = tpu.matmul %94, %11, %cst_52 {dimension_numbers = #tpu.dot_dimension_numbers<[1], [0], [0], [1], [0, 0, 1, 1], [], []>} : vector<2x32xf32>, vector<32x32xf32>, vector<2x32xf32> -> vector<2x32xf32>
    %128 = vector.shape_cast %112 : vector<2x16xf32> to vector<2x16x1xf32>
    %129 = vector.shape_cast %7 : vector<1x32xf32> to vector<1x1x32xf32>
    %130 = vector.broadcast %128 : vector<2x16x1xf32> to vector<2x16x32xf32>
    %131 = vector.broadcast %129 : vector<1x1x32xf32> to vector<2x16x32xf32>
    %132 = arith.mulf %130, %131 : vector<2x16x32xf32>
    %133 = vector.shape_cast %127 : vector<2x32xf32> to vector<2x1x32xf32>
    %134 = vector.broadcast %133 : vector<2x1x32xf32> to vector<2x16x32xf32>
    %135 = arith.addf %122, %134 : vector<2x16x32xf32>
    %136 = arith.addf %135, %132 : vector<2x16x32xf32>
    %137 = arith.addf %136, %126 : vector<2x16x32xf32>
    %138 = vector.shape_cast %8 : vector<1x32xf32> to vector<1x1x32xf32>
    %139 = vector.broadcast %138 : vector<1x1x32xf32> to vector<2x16x32xf32>
    %140 = arith.addf %137, %139 : vector<2x16x32xf32>
    %cst_53 = arith.constant 0.000000e+00 : f32
    %141 = vector.broadcast %cst_53 : f32 to vector<2x16x32xf32>
    %142 = arith.maximumf %140, %141 : vector<2x16x32xf32>
    %143 = vector.shape_cast %94 : vector<2x32xf32> to vector<2x1x32xf32>
    %144 = vector.broadcast %143 : vector<2x1x32xf32> to vector<2x16x32xf32>
    %145 = arith.mulf %142, %144 : vector<2x16x32xf32>
    %cst_54 = arith.constant dense<0.000000e+00> : vector<2x16xf32>
    %146 = vector.multi_reduction <add>, %145, %cst_54 [2] : vector<2x16x32xf32> to vector<2x16xf32>
    %147 = arith.mulf %142, %142 : vector<2x16x32xf32>
    %cst_55 = arith.constant dense<0.000000e+00> : vector<2x16xf32>
    %148 = vector.multi_reduction <add>, %147, %cst_55 [2] : vector<2x16x32xf32> to vector<2x16xf32>
    %149 = arith.mulf %94, %94 : vector<2x32xf32>
    %cst_56 = arith.constant dense<0.000000e+00> : vector<2xf32>
    %150 = vector.multi_reduction <add>, %149, %cst_56 [1] : vector<2x32xf32> to vector<2xf32>
    %151 = vector.shape_cast %150 : vector<2xf32> to vector<2x1xf32>
    %cst_57 = arith.constant 1.000000e-16 : f32
    %152 = vector.broadcast %cst_57 : f32 to vector<2x16xf32>
    %153 = arith.maximumf %148, %152 : vector<2x16xf32>
    %154 = math.rsqrt %153 : vector<2x16xf32>
    %cst_58 = arith.constant 1.000000e-16 : f32
    %155 = vector.broadcast %cst_58 : f32 to vector<2x1xf32>
    %156 = arith.maximumf %151, %155 : vector<2x1xf32>
    %157 = math.rsqrt %156 : vector<2x1xf32>
    %158 = vector.broadcast %157 : vector<2x1xf32> to vector<2x16xf32>
    %159 = arith.mulf %154, %158 : vector<2x16xf32>
    %160 = arith.mulf %146, %159 : vector<2x16xf32>
    %cst_59 = arith.constant 5.000000e-01 : f32
    %161 = vector.broadcast %cst_59 : f32 to vector<2x16xf32>
    %162 = arith.cmpf ogt, %160, %161 : vector<2x16xf32>
    %163 = arith.extui %162 : vector<2x16xi1> to vector<2x16xi32>
    %164 = arith.sitofp %163 : vector<2x16xi32> to vector<2x16xf32>
    %165 = vector.shape_cast %164 : vector<2x16xf32> to vector<2x16x1xf32>
    %166 = vector.broadcast %165 : vector<2x16x1xf32> to vector<2x16x32xf32>
    %167 = arith.mulf %142, %166 : vector<2x16x32xf32>
    %cst_60 = arith.constant dense<0.000000e+00> : vector<2x32xf32>
    %168 = vector.multi_reduction <add>, %167, %cst_60 [1] : vector<2x16x32xf32> to vector<2x32xf32>
    %cst_61 = arith.constant dense<0.000000e+00> : vector<2xf32>
    %169 = vector.multi_reduction <add>, %164, %cst_61 [1] : vector<2x16xf32> to vector<2xf32>
    %170 = vector.shape_cast %169 : vector<2xf32> to vector<2x1xf32>
    %cst_62 = arith.constant 9.99999974E-6 : f32
    %171 = vector.broadcast %cst_62 : f32 to vector<2x1xf32>
    %172 = arith.addf %170, %171 : vector<2x1xf32>
    %173 = vector.broadcast %172 : vector<2x1xf32> to vector<2x32xf32>
    %174 = arith.divf %168, %173 : vector<2x32xf32>
    %175 = vector.shape_cast %174 : vector<2x32xf32> to vector<2x1x32xf32>
    %176 = vector.broadcast %175 : vector<2x1x32xf32> to vector<2x16x32xf32>
    %177 = arith.mulf %27, %176 : vector<2x16x32xf32>
    %cst_63 = arith.constant dense<0.000000e+00> : vector<2x16xf32>
    %178 = vector.multi_reduction <add>, %177, %cst_63 [2] : vector<2x16x32xf32> to vector<2x16xf32>
    %179 = arith.mulf %27, %27 : vector<2x16x32xf32>
    %cst_64 = arith.constant dense<0.000000e+00> : vector<2x16xf32>
    %180 = vector.multi_reduction <add>, %179, %cst_64 [2] : vector<2x16x32xf32> to vector<2x16xf32>
    %181 = arith.mulf %174, %174 : vector<2x32xf32>
    %cst_65 = arith.constant dense<0.000000e+00> : vector<2xf32>
    %182 = vector.multi_reduction <add>, %181, %cst_65 [1] : vector<2x32xf32> to vector<2xf32>
    %183 = vector.shape_cast %182 : vector<2xf32> to vector<2x1xf32>
    %cst_66 = arith.constant 1.000000e-16 : f32
    %184 = vector.broadcast %cst_66 : f32 to vector<2x16xf32>
    %185 = arith.maximumf %180, %184 : vector<2x16xf32>
    %186 = math.rsqrt %185 : vector<2x16xf32>
    %cst_67 = arith.constant 1.000000e-16 : f32
    %187 = vector.broadcast %cst_67 : f32 to vector<2x1xf32>
    %188 = arith.maximumf %183, %187 : vector<2x1xf32>
    %189 = math.rsqrt %188 : vector<2x1xf32>
    %190 = vector.broadcast %189 : vector<2x1xf32> to vector<2x16xf32>
    %191 = arith.mulf %186, %190 : vector<2x16xf32>
    %192 = arith.mulf %178, %191 : vector<2x16xf32>
    %193 = vector.shape_cast %9 : vector<1x32xf32> to vector<1x1x32xf32>
    %194 = vector.broadcast %193 : vector<1x1x32xf32> to vector<2x16x32xf32>
    %195 = arith.mulf %142, %194 : vector<2x16x32xf32>
    %cst_68 = arith.constant dense<0.000000e+00> : vector<2x16xf32>
    %196 = vector.multi_reduction <add>, %195, %cst_68 [2] : vector<2x16x32xf32> to vector<2x16xf32>
    %197 = vector.broadcast %10 : vector<1x1xf32> to vector<2x16xf32>
    %198 = arith.addf %196, %197 : vector<2x16xf32>
    %cst_69 = arith.constant 5.000000e-01 : f32
    %199 = vector.broadcast %cst_69 : f32 to vector<2x16xf32>
    %200 = arith.mulf %199, %192 : vector<2x16xf32>
    %cst_70 = arith.constant 5.000000e-01 : f32
    %201 = vector.broadcast %cst_70 : f32 to vector<2x16xf32>
    %202 = arith.mulf %201, %198 : vector<2x16xf32>
    %203 = arith.addf %200, %202 : vector<2x16xf32>
    %c0_71 = arith.constant 0 : index
    %c0_72 = arith.constant 0 : index
    %204 = vector.load %arg7[%c0_71, %c0_72] : memref<2x16xf32, #tpu.memory_space<vmem>>, vector<2x16xf32>
    tpu.vector_store %arg7[%c0_71, %c0_72], %203 {strides = array<i32>} : memref<2x16xf32, #tpu.memory_space<vmem>>, vector<2x16xf32>,
    %205 = tpu.concatenate %174, %89, %57, %94, %52 in 0 : vector<2x32xf32>, vector<2x32xf32>, vector<2x32xf32>, vector<2x32xf32>, vector<4x32xf32> -> vector<12x32xf32>
    %c0_73 = arith.constant 0 : index
    %c0_74 = arith.constant 0 : index
    %206 = vector.load %arg5[%c0_73, %c0_74] : memref<12x32xf32, #tpu.memory_space<vmem>>, vector<12x32xf32>
    tpu.vector_store %arg5[%c0_73, %c0_74], %205 {strides = array<i32>} : memref<12x32xf32, #tpu.memory_space<vmem>>, vector<12x32xf32>,
    return
  }
}

</mosaic_0001>

<bundles_post_ra>
// kernel: fgnet_plus_forward.1
= control target key start
LH: loop header
LB: loop body
LE: loop exit
PB: predicated region body
PF: predicated region fallthrough
CT: control target
= control target key end

     0   :  { %vm354_vm0 = vcmask 261120   ;;  %vm840_vm1 = vcmask 125952   ;;  %vm1406_vm2 = vcmask 130048   ;;  %s2288_s17 = smov 16   ;;  %s2289_s21 = smov 112   ;;  %s3497_s3 = inlined_call_operand.vmem [shape: bf16[328,48], index: 3, kind: input, shape index: {}]   ;;  %s3498_s4 = inlined_call_operand.vmem [shape: f32[40,48], index: 4, kind: input, shape index: {}]   ;;  %s3499_s0 = inlined_call_operand.vmem [shape: bf16[96,256], index: 0, kind: input, shape index: {}]   ;;  %s3500_s2 = inlined_call_operand.vmem [shape: f32[1024,16], index: 2, kind: input, shape index: {}]   ;;  %s3501_s1 = inlined_call_operand.vmem [shape: f32[4,1024], index: 1, kind: input, shape index: {}]   ;;  %s3502_s6 = inlined_call_operand.vmem [shape: f32[32,16], index: 6, kind: output, shape index: {1}]   ;;  %s3503_s5 = inlined_call_operand.vmem [shape: f32[12,32], index: 5, kind: output, shape index: {0}]   ;;  %s3504_s7 = inlined_call_operand.vmem [shape: f32[2,16], index: 7, kind: output, shape index: {2}]  }
   0x1   :  { %v2160_v0 = vld [vmem:[%s3497_s3 + $0x38] sm:$0xff]  ;;  %v2159_v2 = vld [vmem:[%s3497_s3 + $0x30] sm:$0xff]  ;;  %v2158_v4 = vld [vmem:[%s3497_s3 + $0x28] sm:$0xff] }
   0x2   :  { %v2168_v1 = vld [vmem:[%s3497_s3 + $0x78] sm:$0xff]  ;;  %245 = vmatpush.bf16.msra.mxu0 %v2160_v0  ;;  %v2167_v3 = vld [vmem:[%s3497_s3 + $0x70] sm:$0xff]  ;;  %v2166_v5 = vld [vmem:[%s3497_s3 + $0x68] sm:$0xff] }
   0x3   :  { %284 = vmatpush.bf16.msra.mxu1 %v2168_v1  ;;  %v2157_v6 = vld [vmem:[%s3497_s3 + $0x20] sm:$0xff]  ;;  %v2156_v8 = vld [vmem:[%s3497_s3 + $0x18] sm:$0xff]  ;;  %v2155_v10 = vld [vmem:[%s3497_s3 + $0x10] sm:$0xff] }
   0x4   :  { %v2165_v7 = vld [vmem:[%s3497_s3 + $0x60] sm:$0xff]  ;;  %v2164_v9 = vld [vmem:[%s3497_s3 + $0x58] sm:$0xff]  ;;  %v2163_v11 = vld [vmem:[%s3497_s3 + $0x50] sm:$0xff] }
   0x5   :  { %v2154_v12 = vld [vmem:[%s3497_s3 + $0x8] sm:$0xff]  ;;  %v2153_v14 = vld [vmem:[%s3497_s3] sm:$0xff]  ;;  %v2016_v22 = vld [vmem:[%s3499_s0 + $0x10] sm:$0xf] }
   0x6   :  { %246 = vmatpush.bf16.msra.mxu0 %v2159_v2  ;;  %v2162_v13 = vld [vmem:[%s3497_s3 + $0x48] sm:$0xff]  ;;  %v2161_v15 = vld [vmem:[%s3497_s3 + $0x40] sm:$0xff]  ;;  %v2176_v23 = vld [vmem:[%s3499_s0 + $0x14] sm:$0xf0] }
   0x7   :  { %285 = vmatpush.bf16.msra.mxu1 %v2167_v3  ;;  %v2008_v16 = vld [vmem:[%s3499_s0] sm:$0xf]  ;;  %v2174_v17 = vld [vmem:[%s3499_s0 + $0x4] sm:$0xf0]  ;;  %v2173_v18 = vld [vmem:[%s3499_s0 + $0x4] sm:$0xf]  ;;  %v2017_v26 = vor.u32 %v2176_v23, %v2016_v22 }
   0x8   :  { %v2010_v19 = vld [vmem:[%s3499_s0 + $0x8] sm:$0xf0]  ;;  %v2009_v20 = vor.u32 %v2174_v17, %v2008_v16  ;;  %v2175_v24 = vld [vmem:[%s3499_s0 + $0x14] sm:$0xf]  ;;  %v2018_v25 = vld [vmem:[%s3499_s0 + $0x18] sm:$0xf0] }
   0x9   :  { %v2013_v21 = vor.u32 %v2173_v18, %v2010_v19  ;;  %v2021_v27 = vor.u32 %v2175_v24, %v2018_v25  ;;  %v2024_v28 = vld [vmem:[%s3499_s0 + $0x20] sm:$0xf]  ;;  %v2178_v29 = vld [vmem:[%s3499_s0 + $0x24] sm:$0xf0]  ;;  %v2177_v30 = vld [vmem:[%s3499_s0 + $0x24] sm:$0xf] }
   0xa   :  { %247 = vmatpush.bf16.msra.mxu0 %v2158_v4  ;;  %v2026_v31 = vld [vmem:[%s3499_s0 + $0x28] sm:$0xf0]  ;;  %v2025_v32 = vor.u32 %v2178_v29, %v2024_v28  ;;  %v2032_v34 = vld [vmem:[%s3499_s0 + $0x30] sm:$0xf]  ;;  %v2180_v35 = vld [vmem:[%s3499_s0 + $0x34] sm:$0xf0] }
   0xb   :  { %286 = vmatpush.bf16.msra.mxu1 %v2166_v5  ;;  %v2029_v33 = vor.u32 %v2177_v30, %v2026_v31  ;;  %v2179_v36 = vld [vmem:[%s3499_s0 + $0x34] sm:$0xf]  ;;  %v2034_v37 = vld [vmem:[%s3499_s0 + $0x38] sm:$0xf0]  ;;  %v2033_v38 = vor.u32 %v2180_v35, %v2032_v34  ;;  %v441_v42 = vld [vmem:[%s3500_s2 + $0x68] sm:$0xff] }
   0xc   :  { %v2037_v39 = vor.u32 %v2179_v36, %v2034_v37  ;;  %v443_v40 = vld [vmem:[%s3500_s2 + $0x78] sm:$0xff]  ;;  %v442_v41 = vld [vmem:[%s3500_s2 + $0x70] sm:$0xff]  ;;  %v440_v43 = vld [vmem:[%s3500_s2 + $0x60] sm:$0xff] }
   0xd   :  { %583 = vmatpush.msra.mxu3 %v443_v40  ;;  %v439_v44 = vld [vmem:[%s3500_s2 + $0x58] sm:$0xff]  ;;  %v2040_v45 = vld [vmem:[%s3499_s0 + $0x40] sm:$0xf]  ;;  %v438_v46 = vld [vmem:[%s3500_s2 + $0x50] sm:$0xff] }
   0xe   :  { %248 = vmatpush.bf16.msra.mxu0 %v2157_v6  ;;  %v2182_v47 = vld [vmem:[%s3499_s0 + $0x44] sm:$0xf0]  ;;  %v2181_v48 = vld [vmem:[%s3499_s0 + $0x44] sm:$0xf]  ;;  %v2042_v49 = vld [vmem:[%s3499_s0 + $0x48] sm:$0xf0] }
   0xf   :  { %287 = vmatpush.bf16.msra.mxu1 %v2165_v7  ;;  %584 = vmatpush.msra.mxu3 %v442_v41  ;;  %v437_v50 = vld [vmem:[%s3500_s2 + $0x48] sm:$0xff]  ;;  %v2041_v51 = vor.u32 %v2182_v47, %v2040_v45  ;;  %v2045_v52 = vor.u32 %v2181_v48, %v2042_v49  ;;  %v436_v53 = vld [vmem:[%s3500_s2 + $0x40] sm:$0xff]  ;;  %v435_v54 = vld [vmem:[%s3500_s2 + $0x38] sm:$0xff] }
  0x10   :  { %v434_v55 = vld [vmem:[%s3500_s2 + $0x30] sm:$0xff]  ;;  %v433_v56 = vld [vmem:[%s3500_s2 + $0x28] sm:$0xff]  ;;  %v432_v57 = vld [vmem:[%s3500_s2 + $0x20] sm:$0xff] }
  0x11   :  { %585 = vmatpush.msra.mxu3 %v441_v42  ;;  %v431_v58 = vld [vmem:[%s3500_s2 + $0x18] sm:$0xff]  ;;  %v2048_v59 = vld [vmem:[%s3499_s0 + $0x50] sm:$0xf]  ;;  %v2183_v62 = vld [vmem:[%s3499_s0 + $0x54] sm:$0xf] }
  0x12   :  { %249 = vmatpush.bf16.msra.mxu0 %v2156_v8  ;;  %v430_v60 = vld [vmem:[%s3500_s2 + $0x10] sm:$0xff]  ;;  %v2184_v61 = vld [vmem:[%s3499_s0 + $0x54] sm:$0xf0]  ;;  %v2050_v63 = vld [vmem:[%s3499_s0 + $0x58] sm:$0xf0] }
  0x13   :  { %288 = vmatpush.bf16.msra.mxu1 %v2164_v9  ;;  %586 = vmatpush.msra.mxu3 %v440_v43  ;;  %v429_v0 = vld [vmem:[%s3500_s2 + $0x8] sm:$0xff]  ;;  %v2049_v1 = vor.u32 %v2184_v61, %v2048_v59  ;;  %v2053_v2 = vor.u32 %v2183_v62, %v2050_v63  ;;  %v428_v3 = vld [vmem:[%s3500_s2] sm:$0xff]  ;;  %v459_v4 = vld [vmem:[%s3500_s2 + $0xf8] sm:$0xff] }
  0x14   :  { %v458_v5 = vld [vmem:[%s3500_s2 + $0xf0] sm:$0xff]  ;;  %v457_v6 = vld [vmem:[%s3500_s2 + $0xe8] sm:$0xff]  ;;  %v456_v7 = vld [vmem:[%s3500_s2 + $0xe0] sm:$0xff] }
  0x15   :  { %587 = vmatpush.msra.mxu3 %v439_v44  ;;  %v455_v8 = vld [vmem:[%s3500_s2 + $0xd8] sm:$0xff]  ;;  %v454_v9 = vld [vmem:[%s3500_s2 + $0xd0] sm:$0xff]  ;;  %v449_v16 = vld [vmem:[%s3500_s2 + $0xa8] sm:$0xff] }
  0x16   :  { %250 = vmatpush.bf16.msra.mxu0 %v2155_v10  ;;  %v453_v10 = vld [vmem:[%s3500_s2 + $0xc8] sm:$0xff]  ;;  %v448_v17 = vld [vmem:[%s3500_s2 + $0xa0] sm:$0xff]  ;;  %v447_v19 = vld [vmem:[%s3500_s2 + $0x98] sm:$0xff] }
  0x17   :  { %289 = vmatpush.bf16.msra.mxu1 %v2163_v11  ;;  %588 = vmatpush.msra.mxu3 %v438_v46  ;;  %v2170_v11 = vld [vmem:[%s3497_s3 + $0x88] sm:$0xff]  ;;  %v424_v18 = vld [vmem:[%s3501_s1] sm:$0xff]  ;;  %v490_v22 = vld [vmem:[%s3500_s2 + $0x1f0] sm:$0xff] }
  0x18   :  { %379 = vmatpush.bf16.msra.mxu2 %v2170_v11  ;;  %560 = vst [vmem:[#allocation1] ss:$2 sm:$0xff] %v424_v18  ;;  %v445_v23 = vld [vmem:[%s3500_s2 + $0x88] sm:$0xff]  ;;  %v444_v24 = vld [vmem:[%s3500_s2 + $0x80] sm:$0xff]  ;;  %v507_v28 = vld [vmem:[%s3500_s2 + $0x278] sm:$0xff] }
  0x19   :  { %589 = vmatpush.msra.mxu3 %v437_v50  ;;  %v523_v29 = vld [vmem:[%s3500_s2 + $0x2f8] sm:$0xff]  ;;  %v489_v30 = vld [vmem:[%s3500_s2 + $0x1e8] sm:$0xff]  ;;  %v2585_v35 = vld [vmem:[%s3498_s4] ss:$0 sm:$0xff] }
  0x1a   :  { %251 = vmatpush.bf16.msra.mxu0 %v2154_v12  ;;  %v452_v12 = vld [vmem:[%s3500_s2 + $0xc0] sm:$0xff]  ;;  %v473_v34 = vld [vmem:[%s3500_s2 + $0x168] sm:$0xff]  ;;  %v471_v37 = vld [vmem:[%s3500_s2 + $0x158] sm:$0xff] }
  0x1b   :  { %290 = vmatpush.bf16.msra.mxu1 %v2162_v13  ;;  %590 = vmatpush.msra.mxu3 %v436_v53  ;;  %v451_v13 = vld [vmem:[%s3500_s2 + $0xb8] sm:$0xff]  ;;  %v472_v36 = vld [vmem:[%s3500_s2 + $0x160] sm:$0xff]  ;;  %v505_v41 = vld [vmem:[%s3500_s2 + $0x268] sm:$0xff] }
  0x1c   :  { %v488_v40 = vld [vmem:[%s3500_s2 + $0x1e0] sm:$0xff]  ;;  %v470_v42 = vld [vmem:[%s3500_s2 + $0x150] sm:$0xff]  ;;  %v521_v43 = vld [vmem:[%s3500_s2 + $0x2e8] sm:$0xff] }
  0x1d   :  { %591 = vmatpush.msra.mxu3 %v435_v54  ;;  %v469_v44 = vld [vmem:[%s3500_s2 + $0x148] sm:$0xff]  ;;  %v468_v49 = vld [vmem:[%s3500_s2 + $0x140] sm:$0xff]  ;;  %v466_v54 = vld [vmem:[%s3500_s2 + $0x130] sm:$0xff] }
  0x1e   :  { %252 = vmatpush.bf16.msra.mxu0 %v2153_v14  ;;  %v2169_v14 = vld [vmem:[%s3497_s3 + $0x80] sm:$0xff]  ;;  %v486_v61 = vld [vmem:[%s3500_s2 + $0x1d0] sm:$0xff]  ;;  %v465_v62 = vld [vmem:[%s3500_s2 + $0x128] sm:$0xff] }
  0x1f   :  { %291 = vmatpush.bf16.msra.mxu1 %v2161_v15  ;;  %592 = vmatpush.msra.mxu3 %v434_v55  ;;  %v450_v15 = vld [vmem:[%s3500_s2 + $0xb0] sm:$0xff]  ;;  %v567_v25 = vld.sshfl [vmem:[#allocation1] sm:$0xff pattern:$0x75316420]  ;;  %v461_v11 = vld [vmem:[%s3500_s2 + $0x108] sm:$0xff] }
  0x20   :  { %380 = vmatpush.bf16.msra.mxu2 %v2169_v14  ;;  %v464_v63 = vld [vmem:[%s3500_s2 + $0x120] sm:$0xff] }
  0x21   :  { %253 = vmatmul.bf16.vlgmr.msra.gmra.mxu0 %v2009_v20  ;;  %593 = vmatpush.msra.mxu3 %v433_v56  ;;  %v491_v20 = vld [vmem:[%s3500_s2 + $0x1f8] sm:$0xff]  ;;  %v460_v14 = vld [vmem:[%s3500_s2 + $0x100] sm:$0xff] }
  0x22   :  { %292 = vmatmul.bf16.vlgmr.msra.gmra.mxu1 %v2013_v21  ;;  %v446_v21 = vld [vmem:[%s3500_s2 + $0x90] sm:$0xff]  ;;  %663 = vmatpush.msrb.mxu0 %v507_v28  ;;  %v487_v56 = vld [vmem:[%s3500_s2 + $0x1d8] sm:$0xff]  ;;  %v500_v28 = vld [vmem:[%s3500_s2 + $0x240] sm:$0xff] }
  0x23   :  { %594 = vmatpush.msra.mxu3 %v432_v57  ;;  %683 = vmatpush.msrb.mxu1 %v523_v29  ;;  %v504_v57 = vld [vmem:[%s3500_s2 + $0x260] sm:$0xff] }
  0x24   :  { %643 = vmatpush.msrb.mxu2 %v491_v20  ;;  %v518_v20 = vld [vmem:[%s3500_s2 + $0x2d0] sm:$0xff]  ;;  %v516_v29 = vld [vmem:[%s3500_s2 + $0x2c0] sm:$0xff] }
  0x25   :  { %595 = vmatpush.msra.mxu3 %v431_v58  ;;  %v520_v58 = vld [vmem:[%s3500_s2 + $0x2e0] sm:$0xff] }
  0x26   :  { %644 = vmatpush.msrb.mxu2 %v490_v22  ;;  %v501_v22 = vld [vmem:[%s3500_s2 + $0x248] sm:$0xff] }
  0x27   :  { %596 = vmatpush.msra.mxu3 %v430_v60 }
  0x28   :  { %645 = vmatpush.msrb.mxu2 %v489_v30  ;;  %v482_v30 = vld [vmem:[%s3500_s2 + $0x1b0] sm:$0xff] }
  0x29   :  { %597 = vmatpush.msra.mxu3 %v429_v0  ;;  %v568_v0 = vld.sshfl [vmem:[#allocation1 + $0x8] sm:$0xff pattern:$0x75316420] }
  0x2a   :  { %646 = vmatpush.msrb.mxu2 %v488_v40 }
  0x2b   :  { %598 = vmatpush.msra.mxu3 %v428_v3 }
  0x2c   :  { %599 = vmatmul.f32.vlgmr.msra.gmra.mxu3 %v567_v25  ;;  %647 = vmatpush.msrb.mxu2 %v487_v56  ;;  %v517_v25 = vld [vmem:[%s3500_s2 + $0x2c8] sm:$0xff] }
  0x2d   :  { %603 = vmatpush.msrb.mxu3 %v459_v4  ;;  %v503_v4 = vld [vmem:[%s3500_s2 + $0x258] sm:$0xff] }
  0x2e   :  { %648 = vmatpush.msrb.mxu2 %v486_v61  ;;  %v555_v61 = vld [vmem:[%s3500_s2 + $0x3f8] sm:$0xff] }
  0x2f   :  { %604 = vmatpush.msrb.mxu3 %v458_v5  ;;  %v519_v5 = vld [vmem:[%s3500_s2 + $0x2d8] sm:$0xff] }
  0x31   :  { %258 = vmatmul.bf16.gmra.mxu0 %v2017_v26  ;;  %605 = vmatpush.msrb.mxu3 %v457_v6  ;;  %v475_v26 = vld [vmem:[%s3500_s2 + $0x178] sm:$0xff]  ;;  %v485_v6 = vld [vmem:[%s3500_s2 + $0x1c8] sm:$0xff] }
  0x32   :  { %297 = vmatmul.bf16.gmra.mxu1 %v2021_v27  ;;  %v474_v27 = vld [vmem:[%s3500_s2 + $0x170] sm:$0xff]  ;;  %649 = vmatpush.msrb.mxu2 %v485_v6  ;;  %v496_v6 = vld [vmem:[%s3500_s2 + $0x220] sm:$0xff] }
  0x33   :  { %606 = vmatpush.msrb.mxu3 %v456_v7  ;;  %v462_v7 = vld [vmem:[%s3500_s2 + $0x110] sm:$0xff] }
  0x35   :  { %607 = vmatpush.msrb.mxu3 %v455_v8  ;;  %v502_v8 = vld [vmem:[%s3500_s2 + $0x250] sm:$0xff] }
  0x37   :  { %608 = vmatpush.msrb.mxu3 %v454_v9 }
  0x39   :  { %609 = vmatpush.msrb.mxu3 %v453_v10 }
  0x3b   :  { %610 = vmatpush.msrb.mxu3 %v452_v12 }
  0x3d   :  { %611 = vmatpush.msrb.mxu3 %v451_v13 }
  0x3f   :  { %612 = vmatpush.msrb.mxu3 %v450_v15 }
  0x41   :  { %263 = vmatmul.bf16.gmra.mxu0 %v2025_v32  ;;  %613 = vmatpush.msrb.mxu3 %v449_v16 }
  0x42   :  { %302 = vmatmul.bf16.gmra.mxu1 %v2029_v33  ;;  %v506_v33 = vld [vmem:[%s3500_s2 + $0x270] sm:$0xff] }
  0x43   :  { %614 = vmatpush.msrb.mxu3 %v448_v17  ;;  %664 = vmatpush.msrb.mxu0 %v506_v33 }
  0x45   :  { %615 = vmatpush.msrb.mxu3 %v447_v19  ;;  %665 = vmatpush.msrb.mxu0 %v505_v41  ;;  %v499_v41 = vld [vmem:[%s3500_s2 + $0x238] sm:$0xff] }
  0x47   :  { %616 = vmatpush.msrb.mxu3 %v446_v21  ;;  %666 = vmatpush.msrb.mxu0 %v504_v57  ;;  %v484_v21 = vld [vmem:[%s3500_s2 + $0x1c0] sm:$0xff] }
  0x48   :  { %650 = vmatpush.msrb.mxu2 %v484_v21  ;;  %v476_v57 = vld [vmem:[%s3500_s2 + $0x180] sm:$0xff] }
  0x49   :  { %617 = vmatpush.msrb.mxu3 %v445_v23  ;;  %667 = vmatpush.msrb.mxu0 %v503_v4  ;;  %v553_v4 = vld [vmem:[%s3500_s2 + $0x3e8] sm:$0xff] }
  0x4b   :  { %618 = vmatpush.msrb.mxu3 %v444_v24  ;;  %668 = vmatpush.msrb.mxu0 %v502_v8  ;;  %v535_v8 = vld [vmem:[%s3500_s2 + $0x358] sm:$0xff] }
  0x4c   :  { %619 = vmatmul.f32.vlgmr.msrb.gmra.mxu3 %v568_v0  ;;  %v554_v0 = vld [vmem:[%s3500_s2 + $0x3f0] sm:$0xff] }
  0x4d   :  { %623 = vmatpush.msra.mxu3 %v475_v26  ;;  %669 = vmatpush.msrb.mxu0 %v501_v22  ;;  %v549_v22 = vld [vmem:[%s3500_s2 + $0x3c8] sm:$0xff] }
  0x4f   :  { %624 = vmatpush.msra.mxu3 %v474_v27  ;;  %v483_v27 = vld [vmem:[%s3500_s2 + $0x1b8] sm:$0xff]  ;;  %670 = vmatpush.msrb.mxu0 %v500_v28 }
  0x50   :  { %651 = vmatpush.msrb.mxu2 %v483_v27 }
  0x51   :  { %268 = vmatmul.bf16.gmra.mxu0 %v2033_v38  ;;  %625 = vmatpush.msra.mxu3 %v473_v34 }
  0x52   :  { %307 = vmatmul.bf16.gmra.mxu1 %v2037_v39  ;;  %v522_v39 = vld [vmem:[%s3500_s2 + $0x2f0] sm:$0xff]  ;;  %652 = vmatpush.msrb.mxu2 %v482_v30 }
  0x53   :  { %626 = vmatpush.msra.mxu3 %v472_v36  ;;  %684 = vmatpush.msrb.mxu1 %v522_v39  ;;  %v481_v39 = vld [vmem:[%s3500_s2 + $0x1a8] sm:$0xff] }
  0x54   :  { %653 = vmatpush.msrb.mxu2 %v481_v39  ;;  %671 = vmatpush.msrb.mxu0 %v499_v41  ;;  %v527_v41 = vld [vmem:[%s3500_s2 + $0x318] sm:$0xff] }
  0x55   :  { %627 = vmatpush.msra.mxu3 %v471_v37  ;;  %685 = vmatpush.msrb.mxu1 %v521_v43  ;;  %v498_v43 = vld [vmem:[%s3500_s2 + $0x230] sm:$0xff] }
  0x56   :  { %672 = vmatpush.msrb.mxu0 %v498_v43 }
  0x57   :  { %628 = vmatpush.msra.mxu3 %v470_v42  ;;  %686 = vmatpush.msrb.mxu1 %v520_v58  ;;  %v515_v42 = vld [vmem:[%s3500_s2 + $0x2b8] sm:$0xff] }
  0x59   :  { %629 = vmatpush.msra.mxu3 %v469_v44  ;;  %687 = vmatpush.msrb.mxu1 %v519_v5 }
  0x5b   :  { %630 = vmatpush.msra.mxu3 %v468_v49  ;;  %688 = vmatpush.msrb.mxu1 %v518_v20  ;;  %v510_v20 = vld [vmem:[%s3500_s2 + $0x290] sm:$0xff] }
  0x5d   :  { %689 = vmatpush.msrb.mxu1 %v517_v25  ;;  %v548_v25 = vld [vmem:[%s3500_s2 + $0x3c0] sm:$0xff] }
  0x5f   :  { %690 = vmatpush.msrb.mxu1 %v516_v29  ;;  %v530_v29 = vld [vmem:[%s3500_s2 + $0x330] sm:$0xff] }
  0x61   :  { %273 = vmatmul.bf16.gmra.mxu0 %v2041_v51  ;;  %v467_v51 = vld [vmem:[%s3500_s2 + $0x138] sm:$0xff]  ;;  %691 = vmatpush.msrb.mxu1 %v515_v42 }
  0x62   :  { %312 = vmatmul.bf16.gmra.mxu1 %v2045_v52  ;;  %631 = vmatpush.msra.mxu3 %v467_v51  ;;  %v497_v51 = vld [vmem:[%s3500_s2 + $0x228] sm:$0xff]  ;;  %v427_v42 = vld [vmem:[%s3501_s1 + $0x18] sm:$0xff] }
  0x63   :  { %673 = vmatpush.msrb.mxu0 %v497_v51  ;;  %566 = vst [vmem:[#allocation1 + $0x30] ss:$2 sm:$0xff] %v427_v42  ;;  %v525_v51 = vld [vmem:[%s3500_s2 + $0x308] sm:$0xff] }
  0x64   :  { %632 = vmatpush.msra.mxu3 %v466_v54  ;;  %v539_v54 = vld [vmem:[%s3500_s2 + $0x378] sm:$0xff] }
  0x65   :  { %674 = vmatpush.msrb.mxu0 %v496_v6 }
  0x66   :  { %633 = vmatpush.msra.mxu3 %v465_v62 }
  0x68   :  { %634 = vmatpush.msra.mxu3 %v464_v63  ;;  %v537_v63 = vld [vmem:[%s3500_s2 + $0x368] sm:$0xff] }
  0x6a   :  { %v574_v6 = vld.sshfl [vmem:[#allocation1 + $0x38] sm:$0xff pattern:$0x75316420] }
  0x71   :  { %278 = vmatmul.bf16.gmra.mxu0 %v2049_v1  ;;  %v425_v1 = vld [vmem:[%s3501_s1 + $0x8] sm:$0xff] }
  0x72   :  { %317 = vmatmul.bf16.gmra.mxu1 %v2053_v2  ;;  %562 = vst [vmem:[#allocation1 + $0x10] ss:$2 sm:$0xff] %v425_v1  ;;  %v463_v2 = vld [vmem:[%s3500_s2 + $0x118] sm:$0xff] }
  0x73   :  { %635 = vmatpush.msra.mxu3 %v463_v2 }
  0x75   :  { %636 = vmatpush.msra.mxu3 %v462_v7  ;;  %v512_v7 = vld [vmem:[%s3500_s2 + $0x2a0] sm:$0xff] }
  0x77   :  { %637 = vmatpush.msra.mxu3 %v461_v11  ;;  %v552_v11 = vld [vmem:[%s3500_s2 + $0x3e0] sm:$0xff] }
  0x79   :  { %v569_v16 = vld.sshfl [vmem:[#allocation1 + $0x10] sm:$0xff pattern:$0x75316420]  ;;  %638 = vmatpush.msra.mxu3 %v460_v14  ;;  %v551_v14 = vld [vmem:[%s3500_s2 + $0x3d8] sm:$0xff] }
  0x7a   :  { %639 = vmatmul.f32.vlgmr.msra.gmra.mxu3 %v569_v16  ;;  %v533_v16 = vld [vmem:[%s3500_s2 + $0x348] sm:$0xff] }
  0x7b   :  { %703 = vmatpush.msrb.mxu3 %v539_v54  ;;  %v524_v54 = vld [vmem:[%s3500_s2 + $0x300] sm:$0xff] }
  0x9e   :  { %v254_v31 = vpop.f32.mrf.mxu0 }
  0x9f   :  { %v293_v32 = vpop.f32.mrf.mxu1  ;;  %v255_v38 = vadd.f32 %v2585_v35, %v254_v31 }
  0xa1   :  { %v294_v47 = vadd.f32 %v293_v32, %v255_v38 }
  0xa3   :  { %v323_v52 = vmax.f32 %v294_v47, 0.0  ;;  %v479_v47 = vld [vmem:[%s3500_s2 + $0x198] sm:$0xff] }
  0xa6   :  { %v256_v45 = vpop.f32.mrf.mxu0 }
  0xa7   :  { %v295_v46 = vpop.f32.mrf.mxu1  ;;  %v257_v48 = vadd.f32 %v2585_v35, %v256_v45 }
  0xa9   :  { %v296_v50 = vadd.f32 %v295_v46, %v257_v48  ;;  %v480_v46 = vld [vmem:[%s3500_s2 + $0x1a0] sm:$0xff]  ;;  %v478_v48 = vld [vmem:[%s3500_s2 + $0x190] sm:$0xff] }
  0xaa   :  { %654 = vmatpush.msrb.mxu2 %v480_v46 }
  0xab   :  { %v324_v53 = vmax.f32 %v296_v50, 0.0  ;;  %v514_v50 = vld [vmem:[%s3500_s2 + $0x2b0] sm:$0xff] }
  0xac   :  { %655 = vmatpush.msrb.mxu2 %v479_v47  ;;  %692 = vmatpush.msrb.mxu1 %v514_v50  ;;  %v426_v47 = vld [vmem:[%s3501_s1 + $0x10] sm:$0xff]  ;;  %v492_v50 = vld [vmem:[%s3500_s2 + $0x200] sm:$0xff] }
  0xad   :  { %v335_v55 = vpack.c.bf16 %v324_v53, %v323_v52  ;;  %v477_v52 = vld [vmem:[%s3500_s2 + $0x188] sm:$0xff]  ;;  %564 = vst [vmem:[#allocation1 + $0x20] ss:$2 sm:$0xff] %v426_v47 }
  0xae   :  { %v259_v59 = vpop.f32.mrf.mxu0  ;;  %656 = vmatpush.msrb.mxu2 %v478_v48  ;;  %v513_v53 = vld [vmem:[%s3500_s2 + $0x2a8] sm:$0xff]  ;;  %v526_v48 = vld [vmem:[%s3500_s2 + $0x310] sm:$0xff] }
  0xaf   :  { %v298_v60 = vpop.f32.mrf.mxu1  ;;  %2126 = vmatmul.msk.bf16.vlgmr.msra.gmra.mxu2 %vm354_vm0, %v335_v55  ;;  %v260_v3 = vadd.f32 %v2585_v35, %v259_v59  ;;  %693 = vmatpush.msrb.mxu1 %v513_v53  ;;  %v542_v53 = vld [vmem:[%s3500_s2 + $0x390] sm:$0xff] }
  0xb0   :  { %657 = vmatpush.msrb.mxu2 %v477_v52  ;;  %v508_v52 = vld [vmem:[%s3500_s2 + $0x280] sm:$0xff] }
  0xb1   :  { %v299_v12 = vadd.f32 %v298_v60, %v260_v3  ;;  %v538_v60 = vld [vmem:[%s3500_s2 + $0x370] sm:$0xff]  ;;  %v536_v3 = vld [vmem:[%s3500_s2 + $0x360] sm:$0xff]  ;;  %694 = vmatpush.msrb.mxu1 %v512_v7 }
  0xb2   :  { %658 = vmatpush.msrb.mxu2 %v476_v57  ;;  %704 = vmatpush.msrb.mxu3 %v538_v60  ;;  %v573_v57 = vld.sshfl [vmem:[#allocation1 + $0x30] sm:$0xff pattern:$0x75316420] }
  0xb3   :  { %v325_v17 = vmax.f32 %v299_v12, 0.0  ;;  %v495_v12 = vld [vmem:[%s3500_s2 + $0x218] sm:$0xff] }
  0xb4   :  { %723 = vmatpush.msra.mxu2 %v555_v61  ;;  %705 = vmatpush.msrb.mxu3 %v537_v63  ;;  %v571_v60 = vld.sshfl [vmem:[#allocation1 + $0x20] sm:$0xff pattern:$0x75316420]  ;;  %v572_v63 = vld.sshfl [vmem:[#allocation1 + $0x28] sm:$0xff pattern:$0x75316420] }
  0xb5   :  { %675 = vmatpush.msrb.mxu0 %v495_v12 }
  0xb6   :  { %v261_v9 = vpop.f32.mrf.mxu0  ;;  %724 = vmatpush.msra.mxu2 %v554_v0  ;;  %706 = vmatpush.msrb.mxu3 %v536_v3 }
  0xb7   :  { %v300_v10 = vpop.f32.mrf.mxu1  ;;  %v262_v13 = vadd.f32 %v2585_v35, %v261_v9 }
  0xb8   :  { %725 = vmatpush.msra.mxu2 %v553_v4  ;;  %707 = vmatpush.msrb.mxu3 %v535_v8 }
  0xb9   :  { %v301_v15 = vadd.f32 %v300_v10, %v262_v13  ;;  %v534_v13 = vld [vmem:[%s3500_s2 + $0x350] sm:$0xff] }
  0xba   :  { %726 = vmatpush.msra.mxu2 %v552_v11  ;;  %708 = vmatpush.msrb.mxu3 %v534_v13  ;;  %v2172_v11 = vld [vmem:[%s3497_s3 + $0x98] sm:$0xff]  ;;  %v2171_v13 = vld [vmem:[%s3497_s3 + $0x90] sm:$0xff] }
  0xbb   :  { %v326_v18 = vmax.f32 %v301_v15, 0.0  ;;  %v511_v15 = vld [vmem:[%s3500_s2 + $0x298] sm:$0xff] }
  0xbc   :  { %695 = vmatpush.msrb.mxu1 %v511_v15  ;;  %727 = vmatpush.msra.mxu2 %v551_v14 }
  0xbd   :  { %v336_v19 = vpack.c.bf16 %v326_v18, %v325_v17  ;;  %v550_v17 = vld [vmem:[%s3500_s2 + $0x3d0] sm:$0xff]  ;;  %709 = vmatpush.msrb.mxu3 %v533_v16  ;;  %v745_v16 = vlaneseq }
  0xbe   :  { %v264_v23 = vpop.f32.mrf.mxu0  ;;  %v494_v18 = vld [vmem:[%s3500_s2 + $0x210] sm:$0xff]  ;;  %696 = vmatpush.msrb.mxu1 %v510_v20  ;;  %728 = vmatpush.msra.mxu2 %v550_v17  ;;  %v2907_v20 = vld [vmem:[%s3498_s4 + $0x1] ss:$0 sm:$0xff] }
  0xbf   :  { %v303_v24 = vpop.f32.mrf.mxu1  ;;  %2127 = vmatmul.msk.bf16.gmra.mxu2 %vm354_vm0, %v336_v19  ;;  %v265_v26 = vadd.f32 %v2585_v35, %v264_v23  ;;  %v532_v19 = vld [vmem:[%s3500_s2 + $0x340] sm:$0xff]  ;;  %676 = vmatpush.msrb.mxu0 %v494_v18  ;;  %v531_v23 = vld [vmem:[%s3500_s2 + $0x338] sm:$0xff]  ;;  %v2898_v18 = vshrl.u32 %v745_v16, 7 }
  0xc0   :  { %710 = vmatpush.msrb.mxu3 %v532_v19  ;;  %729 = vmatpush.msra.mxu2 %v549_v22  ;;  %v600_v22 = vpop.f32.mrf.mxu3 }
  0xc1   :  { %v304_v33 = vadd.f32 %v303_v24, %v265_v26  ;;  %v493_v24 = vld [vmem:[%s3500_s2 + $0x208] sm:$0xff]  ;;  %v2901_v19 = vadd.s32 8, %v2898_v18  ;;  %2195 = vset.pattern.permute.xlu0 %v2898_v18 }
  0xc2   :  { %677 = vmatpush.msrb.mxu0 %v493_v24  ;;  %v509_v26 = vld [vmem:[%s3500_s2 + $0x288] sm:$0xff]  ;;  %711 = vmatpush.msrb.mxu3 %v531_v23 }
  0xc3   :  { %v327_v37 = vmax.f32 %v304_v33, 0.0  ;;  %697 = vmatpush.msrb.mxu1 %v509_v26  ;;  %730 = vmatpush.msra.mxu2 %v548_v25  ;;  %v529_v33 = vld [vmem:[%s3500_s2 + $0x328] sm:$0xff] }
  0xc4   :  { %712 = vmatpush.msrb.mxu3 %v530_v29  ;;  %678 = vmatpush.msrb.mxu0 %v492_v50 }
  0xc5   :  { %698 = vmatpush.msrb.mxu1 %v508_v52  ;;  %679 = vmatmul.f32.vlgmr.msrb.gmra.mxu0 %v571_v60 }
  0xc6   :  { %v266_v31 = vpop.f32.mrf.mxu0  ;;  %713 = vmatpush.msrb.mxu3 %v529_v33  ;;  %699 = vmatmul.f32.vlgmr.msrb.gmra.mxu1 %v572_v63  ;;  %v2235_v63 = vld [vmem:[%s3498_s4 + $0x2] ss:$0 sm:$0xff] }
  0xc7   :  { %v305_v32 = vpop.f32.mrf.mxu1  ;;  %v267_v34 = vadd.f32 %v2585_v35, %v266_v31  ;;  %1389 = vmatpush.bf16.msra.mxu0 %v2172_v11  ;;  %2198 = vset.pattern.permute.xlu2 %v2901_v19 }
  0xc8   :  { %2196 = vset.pattern.permute.xlu1 %v2901_v19 }
  0xc9   :  { %v306_v36 = vadd.f32 %v305_v32, %v267_v34  ;;  %v547_v32 = vld [vmem:[%s3500_s2 + $0x3b8] sm:$0xff] }
  0xca   :  { %731 = vmatpush.msra.mxu2 %v547_v32 }
  0xcb   :  { %v328_v38 = vmax.f32 %v306_v36, 0.0  ;;  %v546_v36 = vld [vmem:[%s3500_s2 + $0x3b0] sm:$0xff]  ;;  %1390 = vmatpush.bf16.msra.mxu0 %v2171_v13 }
  0xcc   :  { %732 = vmatpush.msra.mxu2 %v546_v36 }
  0xcd   :  { %v337_v40 = vpack.c.bf16 %v328_v38, %v327_v37  ;;  %v528_v37 = vld [vmem:[%s3500_s2 + $0x320] sm:$0xff] }
  0xce   :  { %v269_v44 = vpop.f32.mrf.mxu0  ;;  %714 = vmatpush.msrb.mxu3 %v528_v37 }
  0xcf   :  { %v308_v45 = vpop.f32.mrf.mxu1  ;;  %2128 = vmatmul.msk.bf16.gmra.mxu2 %vm354_vm0, %v337_v40  ;;  %v270_v49 = vadd.f32 %v2585_v35, %v269_v44  ;;  %v545_v40 = vld [vmem:[%s3500_s2 + $0x3a8] sm:$0xff]  ;;  %v544_v44 = vld [vmem:[%s3500_s2 + $0x3a0] sm:$0xff]  ;;  %v620_v29 = vpop.f32.mrf.mxu3 }
  0xd0   :  { %733 = vmatpush.msra.mxu2 %v545_v40  ;;  %715 = vmatpush.msrb.mxu3 %v527_v41  ;;  %v621_v33 = vadd.f32 %v620_v29, %v600_v22 }
  0xd1   :  { %v309_v58 = vadd.f32 %v308_v45, %v270_v49  ;;  %v543_v49 = vld [vmem:[%s3500_s2 + $0x398] sm:$0xff] }
  0xd2   :  { %734 = vmatpush.msra.mxu2 %v544_v44  ;;  %716 = vmatpush.msrb.mxu3 %v526_v48 }
  0xd3   :  { %v329_v1 = vmax.f32 %v309_v58, 0.0  ;;  %v540_v58 = vld [vmem:[%s3500_s2 + $0x380] sm:$0xff] }
  0xd4   :  { %735 = vmatpush.msra.mxu2 %v543_v49  ;;  %717 = vmatpush.msrb.mxu3 %v525_v51 }
  0xd6   :  { %v271_v55 = vpop.f32.mrf.mxu0  ;;  %736 = vmatpush.msra.mxu2 %v542_v53  ;;  %718 = vmatpush.msrb.mxu3 %v524_v54 }
  0xd7   :  { %v310_v56 = vpop.f32.mrf.mxu1  ;;  %v272_v59 = vadd.f32 %v2585_v35, %v271_v55  ;;  %719 = vmatmul.f32.vlgmr.msrb.gmra.mxu3 %v573_v57 }
  0xd9   :  { %v311_v62 = vadd.f32 %v310_v56, %v272_v59  ;;  %v541_v56 = vld [vmem:[%s3500_s2 + $0x388] sm:$0xff] }
  0xda   :  { %737 = vmatpush.msra.mxu2 %v541_v56 }
  0xdb   :  { %v330_v2 = vmax.f32 %v311_v62, 0.0 }
  0xdc   :  { %738 = vmatpush.msra.mxu2 %v540_v58 }
  0xdd   :  { %v338_v5 = vpack.c.bf16 %v330_v2, %v329_v1 }
  0xde   :  { %v274_v9 = vpop.f32.mrf.mxu0 }
  0xdf   :  { %v313_v10 = vpop.f32.mrf.mxu1  ;;  %2129 = vmatmul.msk.bf16.gmra.mxu2 %vm354_vm0, %v338_v5  ;;  %v275_v21 = vadd.f32 %v2585_v35, %v274_v9  ;;  %v570_v5 = vld.sshfl [vmem:[#allocation1 + $0x18] sm:$0xff pattern:$0x75316420] }
  0xe1   :  { %v314_v30 = vadd.f32 %v313_v10, %v275_v21 }
  0xe3   :  { %v331_v38 = vmax.f32 %v314_v30, 0.0 }
  0xe6   :  { %v276_v27 = vpop.f32.mrf.mxu0 }
  0xe7   :  { %v315_v28 = vpop.f32.mrf.mxu1  ;;  %v277_v31 = vadd.f32 %v2585_v35, %v276_v27 }
  0xe9   :  { %v316_v34 = vadd.f32 %v315_v28, %v277_v31 }
  0xeb   :  { %v332_v39 = vmax.f32 %v316_v34, 0.0 }
  0xed   :  { %v339_v43 = vpack.c.bf16 %v332_v39, %v331_v38 }
  0xee   :  { %v279_v45 = vpop.f32.mrf.mxu0 }
  0xef   :  { %v318_v46 = vpop.f32.mrf.mxu1  ;;  %2130 = vmatmul.msk.bf16.gmra.mxu2 %vm354_vm0, %v339_v43  ;;  %v280_v55 = vadd.f32 %v2585_v35, %v279_v45 }
  0xf1   :  { %v319_v61 = vadd.f32 %v318_v46, %v280_v55 }
  0xf3   :  { %v333_v2 = vmax.f32 %v319_v61, 0.0 }
  0xf6   :  { %v281_v59 = vpop.f32.mrf.mxu0 }
  0xf7   :  { %v282_v62 = vadd.f32 %v2585_v35, %v281_v59  ;;  %v320_v0 = vpop.f32.mrf.mxu1 }
  0xf9   :  { %v321_v1 = vadd.f32 %v320_v0, %v282_v62 }
  0xfb   :  { %v334_v3 = vmax.f32 %v321_v1, 0.0 }
  0xfd   :  { %v340_v4 = vpack.c.bf16 %v334_v3, %v333_v2  ;;  %v640_v37 = vpop.f32.mrf.mxu3 }
  0xfe   :  { %v641_v39 = vadd.f32 %v640_v37, %v621_v33 }
  0xff   :  { %2131 = vmatmul.msk.bf16.gmra.mxu2 %vm354_vm0, %v340_v4 }
 0x10f   :  { %659 = vmatmul.f32.vlgmr.msrb.gmra.mxu2 %v570_v5 }
 0x110   :  { %2185 = vmatpush.bf16.msrb.mxu2 %v2172_v11 }
 0x114   :  { %2186 = vmatpush.bf16.msrb.mxu2 %v2171_v13 }
 0x117   :  { %739 = vmatmul.f32.vlgmr.msra.gmra.mxu2 %v574_v6 }
 0x132   :  { %v2875_v7 = vpop.f32.mrf.mxu2 }
 0x13a   :  { %v2877_v8 = vpop.f32.mrf.mxu2 }
 0x142   :  { %v2879_v35 = vpop.f32.mrf.mxu2  ;;  %v680_v41 = vpop.f32.mrf.mxu0 }
 0x143   :  { %v700_v43 = vpop.f32.mrf.mxu1 }
 0x14a   :  { %v2881_v9 = vpop.f32.mrf.mxu2 }
 0x14b   :  { %v2984_v29 = vadd.f32 %v2907_v20, %v2881_v9 }
 0x152   :  { %v2883_v10 = vpop.f32.mrf.mxu2 }
 0x15a   :  { %v2888_v12 = vpop.f32.mrf.mxu2  ;;  %v720_v45 = vpop.f32.mrf.mxu3 }
 0x162   :  { %v2893_v14 = vpop.f32.mrf.mxu2 }
 0x16a   :  { %v2895_v15 = vpop.f32.mrf.mxu2 }
 0x172   :  { %v402_v17 = vpop.f32.mrf.mxu2 }
 0x173   :  { %v403_v21 = vadd.f32 %v2907_v20, %v402_v17 }
 0x175   :  { %v2913_v25 = vmax.f32 %v403_v21, 0.0 }
 0x177   :  { %v1103_v61 = vmul.f32 %v2913_v25, %v2913_v25 }
 0x179   :  { %v1107_v62 = vsel %vm354_vm0, %v1103_v61, 0.0  ;;  %v3036_v61 = vadd.f32 %v2907_v20, %v2877_v8 }
 0x17a   :  { %v404_v23 = vpop.f32.mrf.mxu2 }
 0x17b   :  { %v405_v24 = vadd.f32 %v2907_v20, %v404_v23  ;;  %v2974_v23 = vadd.f32 %v2907_v20, %v2893_v14 }
 0x17d   :  { %v2915_v26 = vmax.f32 %v405_v24, 0.0  ;;  %v2978_v24 = vadd.f32 %v2907_v20, %v2895_v15  ;;  %v3506_v33 = vmax.f32 %v2974_v23, 0.0 }
 0x17f   :  { %v1362_v27 = vpack.c.bf16 %v2915_v26, %v2913_v25  ;;  %v1104_v57 = vmul.f32 %v2915_v26, %v2915_v26  ;;  %v419_v15 = vmax.f32 %v2978_v24, 0.0 }
 0x181   :  { %2144 = vmatmul.msk.bf16.vlgmr.msra.gmra.mxu0 %vm354_vm0, %v1362_v27  ;;  %v1110_v58 = vsel %vm354_vm0, %v1104_v57, 0.0 }
 0x182   :  { %v407_v28 = vpop.f32.mrf.mxu2 }
 0x183   :  { %v408_v30 = vadd.f32 %v2907_v20, %v407_v28 }
 0x185   :  { %v2922_v34 = vmax.f32 %v408_v30, 0.0 }
 0x187   :  { %v1105_v59 = vmul.f32 %v2922_v34, %v2922_v34 }
 0x189   :  { %v1113_v60 = vsel %vm354_vm0, %v1105_v59, 0.0 }
 0x18a   :  { %v409_v31 = vpop.f32.mrf.mxu2 }
 0x18b   :  { %v410_v32 = vadd.f32 %v2907_v20, %v409_v31  ;;  %v2990_v31 = vadd.f32 %v2907_v20, %v2879_v35 }
 0x18d   :  { %v2924_v36 = vmax.f32 %v410_v32, 0.0 }
 0x18f   :  { %v1363_v38 = vpack.c.bf16 %v2924_v36, %v2922_v34 }
 0x191   :  { %2145 = vmatmul.msk.bf16.vlgmr.msrb.gmra.mxu2 %vm354_vm0, %v1363_v38  ;;  %v415_v38 = vmax.f32 %v2984_v29, 0.0 }
 0x192   :  { %v660_v40 = vpop.f32.mrf.mxu2 }
 0x193   :  { %v661_v42 = vadd.f32 %v660_v40, %v641_v39 }
 0x195   :  { %v681_v44 = vadd.f32 %v680_v41, %v661_v42  ;;  %v414_v42 = vmax.f32 %v2990_v31, 0.0 }
 0x197   :  { %v701_v46 = vadd.f32 %v700_v43, %v681_v44 }
 0x199   :  { %v721_v47 = vadd.f32 %v720_v45, %v701_v46 }
 0x19a   :  { %v740_v48 = vpop.f32.mrf.mxu2 }
 0x19b   :  { %v741_v49 = vadd.f32 %v740_v48, %v721_v47 }
 0x19d   :  { %v841_v50 = vsel %vm840_vm1, %v741_v49, 0.0  ;;  %v783_v51 = vperm.slane %v741_v49, 3  ;;  %v757_v52 = vperm.slane %v741_v49, 1  ;;  %v2929_v53 = vsub.f32 1.0, %v741_v49 }
 0x19e   :  { %842 = vadd.xlane.f32.xlu0 %v841_v50  ;;  %v744_v55 = vperm.slane %v741_v49, 0  ;;  %v770_v56 = vperm.slane %v741_v49, 2 }
 0x19f   :  { %794 = vperm.xlu2 %2198, %v783_v51   ;;  %768 = vperm.xlu1 %2196, %v757_v52   ;;  %v2932_v54 = vsel %vm840_vm1, %v2929_v53, 0.0 }
 0x1a7   :  { %2199 = vset.pattern.permute.xlu2 %v2898_v18  ;;  %2197 = vset.pattern.permute.xlu1 %v2898_v18 }
 0x1af   :  { %788 = vperm.xlu1 %2197, %v783_v51   ;;  %749 = vperm.xlu2 %2199, %v744_v55  }
 0x1b2   :  { %762 = vperm.xlu0 %2195, %v757_v52  }
 0x1b7   :  { %2200 = vset.pattern.permute.xlu1 %v2901_v19  ;;  %775 = vperm.xlu2 %2199, %v770_v56  }
 0x1bf   :  { %755 = vperm.xlu1 %2200, %v744_v55   ;;  %v3027_v55 = vadd.f32 %v2907_v20, %v2875_v7 }
 0x1c1   :  { %v3507_v7 = vmax.f32 %v3027_v55, 0.0 }
 0x1c7   :  { %781 = vperm.xlu1 %2200, %v770_v56  }
 0x1dc   :  { %1111 = vadd.xlane.f32.xlu0 %v1110_v58 }
 0x1e0   :  { %1114 = vadd.xlane.f32.xlu2 %v1113_v60 }
 0x1f1   :  { %1108 = vadd.xlane.f32.xlu1 %v1107_v62 }
 0x1f9   :  { %v795_v32 = vpop.permute.xlu2 %794 }
 0x1fa   :  { %v803_v40 = vmul.f32 %v795_v32, %v419_v15 }
 0x1fc   :  { %v832_v47 = vsel %vm354_vm0, %v803_v40, 0.0  ;;  %v3060_v40 = vadd.f32 %v2907_v20, %v2888_v12 }
 0x1fe   :  { %v1392_v0 = vpop.f32.mrf.mxu0 }
 0x1ff   :  { %v2949_v1 = vadd.f32 %v2235_v63, %v1392_v0 }
 0x201   :  { %v1402_v2 = vmax.f32 %v2949_v1, 0.0 }
 0x203   :  { %1407 = vst.msk [vmem:[%s3502_s6] sm:$0xff] %vm1406_vm2, %v1402_v2 }
 0x206   :  { %v1394_v3 = vpop.f32.mrf.mxu0 }
 0x207   :  { %v2956_v4 = vadd.f32 %v2235_v63, %v1394_v3  ;;  %v3505_v3 = vmax.f32 %v3036_v61, 0.0 }
 0x209   :  { %v1403_v5 = vmax.f32 %v2956_v4, 0.0  ;;  %v750_v59 = vpop.permute.xlu2 %749 }
 0x20a   :  { %v796_v8 = vmul.f32 %v750_v59, %v3507_v7 }
 0x20b   :  { %1408 = vst.msk [vmem:[%s3502_s6 + $0x8] sm:$0xff] %vm1406_vm2, %v1403_v5  ;;  %v2963_v6 = vpack.c.bf16 %v1403_v5, %v1402_v2 }
 0x211   :  { %v843_v21 = vpop.xlane.xlu0 %842  ;;  %v769_v22 = vpop.permute.xlu1 %768 }
 0x212   :  { %v2980_v27 = vadd.f32 1e-05, %v843_v21  ;;  %v799_v43 = vmul.f32 %v769_v22, %v415_v38  ;;  %v3050_v21 = vadd.f32 %v2907_v20, %v2883_v10  ;;  %v417_v20 = vmax.f32 %v3060_v40, 0.0 }
 0x214   :  { %v1397_v11 = vpop.f32.mrf.mxu2  ;;  %v2996_v37 = vrot.slane %v2980_v27, 1  ;;  %v3004_v35 = vrot.slane %v2980_v27, 3  ;;  %v814_v48 = vsel %vm354_vm0, %v799_v43, 0.0  ;;  %v3030_v57 = vrot.slane %v2980_v27, 2 }
 0x215   :  { %v2965_v13 = vadd.f32 %v2235_v63, %v1397_v11  ;;  %vm858_vm13 = vweird.f32 %v2980_v27 }
 0x216   :  { %2239 = vrcp.f32 %v2996_v37  ;;  %v877_v59 = vand.u32 2147483647, %v2996_v37  ;;  %vm873_vm5 = vweird.f32 %v2996_v37  ;;  %vm903_vm6 = vweird.f32 %v3004_v35 }
 0x217   :  { %v1404_v17 = vmax.f32 %v2965_v13, 0.0  ;;  %2241 = vrcp.f32 %v3004_v35  ;;  %vm888_vm15 = vweird.f32 %v3030_v57 }
 0x218   :  { %2243 = vrcp.f32 %v2980_v27  ;;  %vm878_vm9 = vcmp.eq.f32.partialorder %v877_v59, 8.507059e+37 }
 0x219   :  { %1409 = vst.msk [vmem:[%s3502_s6 + $0x10] sm:$0xff] %vm1406_vm2, %v1404_v17  ;;  %2245 = vrcp.f32 %v3030_v57 }
 0x21c   :  { %v1399_v28 = vpop.f32.mrf.mxu2  ;;  %v3023_v52 = vpop.eup %2239 }
 0x21d   :  { %v2986_v30 = vadd.f32 %v2235_v63, %v1399_v28  ;;  %v3032_v58 = vpop.eup %2241  ;;  %v869_v62 = vmul.f32 %v3023_v52, %v2996_v37  ;;  %vm874_vm3 = vweird.f32 %v3023_v52 }
 0x21e   :  { %v899_v0 = vmul.f32 %v3032_v58, %v3004_v35  ;;  %v3054_v32 = vpop.eup %2243  ;;  %vm904_vm4 = vweird.f32 %v3032_v58  ;;  %vm3088_vm7 = vmor %vm873_vm5, %vm874_vm3  ;;  %vm1127_vm5 = vcmask 254976  }
 0x21f   :  { %v1405_v14 = vmax.f32 %v2986_v30, 0.0  ;;  %v870_v5 = vsub.f32 1.0, %v869_v62  ;;  %vm3093_vm8 = vmor %vm903_vm6, %vm904_vm4  ;;  %vm859_vm11 = vweird.f32 %v3054_v32  ;;  %vm1124_vm4 = vcmask 1041409  }
 0x220   :  { %v900_v22 = vsub.f32 1.0, %v899_v0  ;;  %vm3114_vm14 = vmor %vm858_vm13, %vm859_vm11  ;;  %vm1954_vm6 = vcmask 1045509  }
 0x221   :  { %1410 = vst.msk [vmem:[%s3502_s6 + $0x18] sm:$0xff] %vm1406_vm2, %v1405_v14  ;;  %v789_v9 = vpop.permute.xlu1 %788  ;;  %v3006_v39 = vpack.c.bf16 %v1405_v14, %v1404_v17  ;;  %v871_v10 = vmul.f32 %v3023_v52, %v870_v5  ;;  %s2287_s6 = smov 120  }
 0x222   :  { %v802_v41 = vmul.f32 %v789_v9, %v3506_v33  ;;  %v3056_v9 = vpop.eup %2245 }
 0x223   :  { %v884_v12 = vmul.f32 %v3056_v9, %v3030_v57  ;;  %v872_v62 = vadd.f32 %v3023_v52, %v871_v10  ;;  %vm889_vm12 = vweird.f32 %v3056_v9 }
 0x224   :  { %v831_v44 = vsel %vm354_vm0, %v802_v41, 0.0  ;;  %v763_v45 = vpop.permute.xlu0 %762  ;;  %v804_v41 = vsel %vm354_vm0, %v796_v8, 0.0  ;;  %vm890_vm1 = vmor %vm888_vm15, %vm889_vm12 }
 0x225   :  { %v798_v46 = vmul.f32 %v763_v45, %v414_v42  ;;  %v833_v49 = vadd.f32 %v832_v47, %v831_v44  ;;  %v776_v44 = vpop.permute.xlu2 %775  ;;  %v416_v47 = vmax.f32 %v3050_v21, 0.0 }
 0x227   :  { %v813_v50 = vsel %vm354_vm0, %v798_v46, 0.0  ;;  %v834_v60 = vrot.slane %v833_v49, 4 }
 0x228   :  { %v815_v51 = vadd.f32 %v814_v48, %v813_v50  ;;  %v901_v48 = vmul.f32 %v3032_v58, %v900_v22 }
 0x229   :  { %v835_v2 = vadd.f32 %v834_v60, %v833_v49  ;;  %v854_v49 = vmul.f32 %v3054_v32, %v2980_v27  ;;  %v879_v60 = vand.u32 2147483648, %v2996_v37  ;;  %v907_v37 = vand.u32 2147483647, %v3004_v35 }
 0x22a   :  { %v816_v56 = vrot.slane %v815_v51, 4  ;;  %v902_v8 = vadd.f32 %v3032_v58, %v901_v48 }
 0x22b   :  { %v836_v14 = vrot.slane %v835_v2, 2  ;;  %v855_v5 = vsub.f32 1.0, %v854_v49  ;;  %vm908_vm10 = vcmp.eq.f32.partialorder %v907_v37, 8.507059e+37 }
 0x22c   :  { %v817_v63 = vadd.f32 %v816_v56, %v815_v51  ;;  %v800_v56 = vmul.f32 %v776_v44, %v416_v47 }
 0x22d   :  { %v837_v50 = vadd.f32 %v836_v14, %v835_v2 }
 0x22e   :  { %v818_v11 = vrot.slane %v817_v63, 2  ;;  %v822_v14 = vsel %vm354_vm0, %v800_v56, 0.0  ;;  %v856_v56 = vmul.f32 %v3054_v32, %v855_v5  ;;  %v892_v5 = vand.u32 2147483647, %v3030_v57 }
 0x230   :  { %v819_v45 = vadd.f32 %v818_v11, %v817_v63  ;;  %vm893_vm3 = vcmp.eq.f32.partialorder %v892_v5, 8.507059e+37 }
 0x231   :  { %v756_v17 = vpop.permute.xlu1 %755 }
 0x232   :  { %v797_v28 = vmul.f32 %v756_v17, %v3505_v3  ;;  %v820_v63 = vrot.slane %v819_v45, 1  ;;  %v838_v17 = vrot.slane %v837_v50, 1 }
 0x234   :  { %v805_v43 = vsel %vm354_vm0, %v797_v28, 0.0  ;;  %v885_v28 = vsub.f32 1.0, %v884_v12  ;;  %v821_v48 = vadd.f32 %v820_v63, %v819_v45  ;;  %v880_v12 = vor.u32 1.1754944e-38, %v879_v60 }
 0x235   :  { %v806_v46 = vadd.f32 %v805_v43, %v804_v41  ;;  %v909_v41 = vand.u32 2147483648, %v3004_v35  ;;  %v862_v63 = vand.u32 2147483647, %v2980_v27 }
 0x236   :  { %v886_v3 = vmul.f32 %v3056_v9, %v885_v28 }
 0x237   :  { %v807_v51 = vrot.slane %v806_v46, 4  ;;  %v910_v35 = vor.u32 1.1754944e-38, %v909_v41  ;;  %vm863_vm2 = vcmp.eq.f32.partialorder %v862_v63, 8.507059e+37 }
 0x239   :  { %v808_v0 = vadd.f32 %v807_v51, %v806_v46  ;;  %v782_v2 = vpop.permute.xlu1 %781  ;;  %v876_v46 = vsel %vm3088_vm7, %v3023_v52, %v872_v62  ;;  %v906_v51 = vsel %vm3093_vm8, %v3032_v58, %v902_v8  ;;  %v857_v62 = vadd.f32 %v3054_v32, %v856_v56 }
 0x23a   :  { %v801_v11 = vmul.f32 %v782_v2, %v417_v20  ;;  %v839_v2 = vadd.f32 %v838_v17, %v837_v50  ;;  %v881_v7 = vsel %vm878_vm9, %v880_v12, %v876_v46  ;;  %v911_v45 = vsel %vm908_vm10, %v910_v35, %v906_v51 }
 0x23b   :  { %v809_v22 = vrot.slane %v808_v0, 2  ;;  %v882_v43 = vmul.f32 %v881_v7, %v821_v48  ;;  %v887_v50 = vadd.f32 %v3056_v9, %v886_v3  ;;  %v861_v3 = vsel %vm3114_vm14, %v3054_v32, %v857_v62 }
 0x23c   :  { %v823_v44 = vsel %vm354_vm0, %v801_v11, 0.0  ;;  %v912_v58 = vmul.f32 %v911_v45, %v839_v2 }
 0x23d   :  { %v824_v49 = vadd.f32 %v823_v44, %v822_v14  ;;  %v810_v11 = vadd.f32 %v809_v22, %v808_v0  ;;  %v864_v0 = vand.u32 2147483648, %v2980_v27  ;;  %v891_v27 = vsel %vm890_vm1, %v3056_v9, %v887_v50 }
 0x23e   :  { %v1082_v7 = vadd.f32 %v912_v58, %v882_v43 }
 0x23f   :  { %v825_v33 = vrot.slane %v824_v49, 4  ;;  %v811_v59 = vrot.slane %v810_v11, 1  ;;  %v865_v14 = vor.u32 1.1754944e-38, %v864_v0 }
 0x240   :  { %v3124_v44 = vmul.f32 0.5, %v1082_v7 }
 0x241   :  { %v826_v52 = vadd.f32 %v825_v33, %v824_v49  ;;  %v894_v33 = vand.u32 2147483648, %v3030_v57  ;;  %v812_v22 = vadd.f32 %v811_v59, %v810_v11  ;;  %v866_v37 = vsel %vm863_vm2, %v865_v14, %v861_v3 }
 0x242   :  { %v1120_v51 = vmul.f32 %v3124_v44, %v3124_v44  ;;  %v1953_v9 = vrot.slane %v3124_v44, 3  ;;  %v1086_v58 = vperm.slane %v3124_v44, 0  ;;  %v1106_v59 = vmul.f32 %v2924_v36, %v2924_v36 }
 0x243   :  { %v827_v60 = vrot.slane %v826_v52, 2  ;;  %v895_v41 = vor.u32 1.1754944e-38, %v894_v33  ;;  %v867_v57 = vmul.f32 %v866_v37, %v812_v22 }
 0x244   :  { %v1123_v56 = vrot.slane %v1120_v51, 7  ;;  %v1089_v50 = vmul.f32 %v1086_v58, %v2922_v34  ;;  %v1090_v7 = vmul.f32 %v1086_v58, %v2924_v36  ;;  %v2285_v51 = vmov 0  }
 0x245   :  { %v828_v17 = vadd.f32 %v827_v60, %v826_v52  ;;  %v896_v46 = vsel %vm893_vm3, %v895_v41, %v891_v27  ;;  %v1116_v60 = vsel %vm354_vm0, %v1106_v59, 0.0  ;;  %2201 = vset.pattern.permute.xlu0 %v2285_v51  ;;  %2207 = vset.pattern.permute.xlu1 %v2285_v51 }
 0x246   :  { %v1097_v63 = vsel %vm354_vm0, %v1089_v50, 0.0  ;;  %v1100_v8 = vsel %vm354_vm0, %v1090_v7, 0.0  ;;  %2213 = vset.pattern.permute.xlu2 %v2285_v51 }
 0x247   :  { %v829_v28 = vrot.slane %v828_v17, 1 }
 0x249   :  { %v830_v10 = vadd.f32 %v829_v28, %v828_v17 }
 0x24b   :  { %v897_v48 = vmul.f32 %v896_v46, %v830_v10 }
 0x24d   :  { %v1081_v49 = vadd.f32 %v897_v48, %v867_v57 }
 0x24f   :  { %v3128_v32 = vmul.f32 0.5, %v1081_v49  ;;  %v1112_v5 = vpop.xlane.xlu0 %1111 }
 0x250   :  { %v1132_v22 = vmax.f32 %v1112_v5, 1e-16 }
 0x251   :  { %v1119_v12 = vmul.f32 %v3128_v32, %v3128_v32  ;;  %v1085_v2 = vperm.slane %v3128_v32, 0  ;;  %v1952_v11 = vrot.slane %v3128_v32, 4 }
 0x252   :  { %2247 = vrsqrt.f32 %v1132_v22  ;;  %vm1151_vm8 = vweird.f32 %v1132_v22 }
 0x253   :  { %v1125_v35 = vsel %vm1124_vm4, %v1123_v56, %v1119_v12  ;;  %v1087_v43 = vmul.f32 %v1085_v2, %v2913_v25  ;;  %v3137_v52 = vsel %vm1954_vm6, %v1953_v9, %v1952_v11  ;;  %v1088_v0 = vmul.f32 %v1085_v2, %v2915_v26  ;;  %v1115_v17 = vpop.xlane.xlu2 %1114 }
 0x254   :  { %v1128_v45 = vsel %vm1127_vm5, %v1125_v35, 0.0  ;;  %v1133_v27 = vmax.f32 %v1115_v17, 1e-16 }
 0x255   :  { %1129 = vadd.xlane.f32.xlu2 %v1128_v45  ;;  %v1091_v62 = vsel %vm354_vm0, %v1087_v43, 0.0  ;;  %v1094_v33 = vsel %vm354_vm0, %v1088_v0, 0.0 }
 0x256   :  { %1092 = vadd.xlane.f32.xlu1 %v1091_v62  ;;  %2249 = vrsqrt.f32 %v1133_v27  ;;  %vm1161_vm14 = vweird.f32 %v1133_v27 }
 0x258   :  { %v2248_v14 = vpop.eup %2247 }
 0x259   :  { %v1146_v46 = vmul.f32 %v2248_v14, %v1132_v22  ;;  %vm1152_vm7 = vweird.f32 %v2248_v14 }
 0x25a   :  { %vm3154_vm12 = vmor %vm1151_vm8, %vm1152_vm7 }
 0x25b   :  { %v1147_v9 = vmul.f32 %v2248_v14, %v1146_v46 }
 0x25c   :  { %v2250_v41 = vpop.eup %2249 }
 0x25d   :  { %1117 = vadd.xlane.f32.xlu2 %v1116_v60  ;;  %v1156_v57 = vmul.f32 %v2250_v41, %v1133_v27  ;;  %v1148_v35 = vmul.f32 0.5, %v1147_v9  ;;  %vm1162_vm10 = vweird.f32 %v2250_v41 }
 0x25e   :  { %1098 = vadd.xlane.f32.xlu1 %v1097_v63  ;;  %vm1163_vm1 = vmor %vm1161_vm14, %vm1162_vm10  ;;  %vm3509_vm14 = vcmask 130112  }
 0x25f   :  { %v1157_v12 = vmul.f32 %v2250_v41, %v1156_v57  ;;  %v1149_v50 = vsub.f32 1.5, %v1148_v35 }
 0x261   :  { %v1158_v43 = vmul.f32 0.5, %v1157_v12  ;;  %v1150_v17 = vmul.f32 %v2248_v14, %v1149_v50 }
 0x263   :  { %v1159_v60 = vsub.f32 1.5, %v1158_v43 }
 0x264   :  { %v1109_v3 = vpop.xlane.xlu1 %1108 }
 0x265   :  { %1095 = vadd.xlane.f32.xlu2 %v1094_v33  ;;  %v1131_v28 = vmax.f32 %v1109_v3, 1e-16  ;;  %v1160_v5 = vmul.f32 %v2250_v41, %v1159_v60  ;;  %v2286_v60 = vmov 0.0  }
 0x267   :  { %2251 = vrsqrt.f32 %v1131_v28  ;;  %vm1141_vm2 = vweird.f32 %v1131_v28  ;;  %v3161_v43 = vsel %vm1163_vm1, %v2250_v41, %v1160_v5  ;;  %vm1419_vm1 = vcmask 64512  }
 0x26d   :  { %1101 = vadd.xlane.f32.xlu2 %v1100_v8  ;;  %v2252_v10 = vpop.eup %2251 }
 0x26e   :  { %v1136_v49 = vmul.f32 %v2252_v10, %v1131_v28  ;;  %vm1142_vm11 = vweird.f32 %v2252_v10 }
 0x26f   :  { %vm1143_vm3 = vmor %vm1141_vm2, %vm1142_vm11 }
 0x270   :  { %v1137_v56 = vmul.f32 %v2252_v10, %v1136_v49 }
 0x272   :  { %v1138_v62 = vmul.f32 0.5, %v1137_v56 }
 0x274   :  { %v1139_v63 = vsub.f32 1.5, %v1138_v62 }
 0x2c8   :  { %v1130_v37 = vpop.xlane.xlu2 %1129 }
 0x2c9   :  { %v1175_v48 = vmax.f32 %v1130_v37, 1e-16  ;;  %v1093_v7 = vpop.xlane.xlu1 %1092  ;;  %v1140_v37 = vmul.f32 %v2252_v10, %v1139_v63 }
 0x2cb   :  { %2253 = vrsqrt.f32 %v1175_v48  ;;  %vm1182_vm13 = vweird.f32 %v1175_v48 }
 0x2d0   :  { %v1118_v2 = vpop.xlane.xlu2 %1117 }
 0x2d1   :  { %v2254_v11 = vpop.eup %2253  ;;  %v1134_v45 = vmax.f32 %v1118_v2, 1e-16  ;;  %v3159_v2 = vsel %vm1143_vm3, %v2252_v10, %v1140_v37  ;;  %v1099_v10 = vpop.xlane.xlu1 %1098 }
 0x2d2   :  { %v1177_v58 = vmul.f32 %v2254_v11, %v1175_v48  ;;  %vm1183_vm9 = vweird.f32 %v2254_v11  ;;  %v3165_v48 = vsel %vm3154_vm12, %v2248_v14, %v1150_v17 }
 0x2d3   :  { %2255 = vrsqrt.f32 %v1134_v45  ;;  %vm1184_vm15 = vmor %vm1182_vm13, %vm1183_vm9  ;;  %vm1171_vm7 = vweird.f32 %v1134_v45  ;;  %vm3510_vm13 = vcmask 1043456  }
 0x2d4   :  { %v1178_v59 = vmul.f32 %v2254_v11, %v1177_v58 }
 0x2d6   :  { %v1179_v0 = vmul.f32 0.5, %v1178_v59 }
 0x2d8   :  { %v1180_v33 = vsub.f32 1.5, %v1179_v0  ;;  %v1096_v9 = vpop.xlane.xlu2 %1095 }
 0x2d9   :  { %v2256_v8 = vpop.eup %2255 }
 0x2da   :  { %v1181_v46 = vmul.f32 %v2254_v11, %v1180_v33  ;;  %v1166_v57 = vmul.f32 %v2256_v8, %v1134_v45  ;;  %vm1172_vm6 = vweird.f32 %v2256_v8 }
 0x2db   :  { %vm1173_vm9 = vmor %vm1171_vm7, %vm1172_vm6 }
 0x2dc   :  { %v1185_v22 = vsel %vm1184_vm15, %v2254_v11, %v1181_v46  ;;  %v1167_v49 = vmul.f32 %v2256_v8, %v1166_v57  ;;  %v3184_v57 = vand.u32 127, %v745_v16  ;;  %vm3508_vm15 = vcmask 123904  }
 0x2dd   :  { %v1187_v12 = vperm.slane %v1185_v22, 0  ;;  %v1188_v56 = vperm.slane %v1185_v22, 1 }
 0x2de   :  { %v1168_v35 = vmul.f32 0.5, %v1167_v49 }
 0x2df   :  { %v1191_v27 = vmul.f32 %v1187_v12, %v3159_v2  ;;  %v1193_v28 = vmul.f32 %v1188_v56, %v3161_v43  ;;  %v1192_v11 = vmul.f32 %v1187_v12, %v3165_v48  ;;  %v3187_v12 = vadd.s32 4294967288, %v3184_v57 }
 0x2e0   :  { %v1169_v62 = vsub.f32 1.5, %v1168_v35  ;;  %v1102_v17 = vpop.xlane.xlu2 %1101 }
 0x2e1   :  { %v1195_v58 = vmul.f32 %v1191_v27, %v1093_v7  ;;  %v1196_v59 = vmul.f32 %v1192_v11, %v1096_v9  ;;  %v1197_v41 = vmul.f32 %v1193_v28, %v1099_v10 }
 0x2e2   :  { %v1170_v50 = vmul.f32 %v2256_v8, %v1169_v62 }
 0x2e3   :  { %vm1199_vm8 = vcmp.gt.f32.partialorder %v1195_v58, 0.7  ;;  %vm1200_vm10 = vcmp.gt.f32.partialorder %v1196_v59, 0.7  ;;  %vm1201_vm11 = vcmp.gt.f32.partialorder %v1197_v41, 0.7 }
 0x2e4   :  { %v2132_v14 = vsel %vm1199_vm8, 1.0, %v2286_v60  ;;  %v2133_v63 = vsel %vm1200_vm10, 1.0, %v2286_v60  ;;  %v3172_v0 = vsel %vm1173_vm9, %v2256_v8, %v1170_v50  ;;  %v2134_v45 = vsel %vm1201_vm11, 1.0, %v2286_v60  ;;  %v64_v8 = vld [vmem:[%s3497_s3 + $0xa0] sm:$0xf] }
 0x2e5   :  { %v2202_v33 = vpack.i.bf16 %v2133_v63, %v2132_v14  ;;  %v1194_v5 = vmul.f32 %v1188_v56, %v3172_v0  ;;  %v1428_v46 = vsel %vm3510_vm13, %v64_v8, 0  ;;  %v75_v8 = vld [vmem:[%s3498_s4 + $0x20] sm:$0xff] }
 0x2e6   :  { %1437 = vmatpush.bf16.msra.mxu1 %v1428_v46  ;;  %2187 = vmatpush.bf16.msra.mxu3 %v1428_v46  ;;  %v74_v46 = vld [vmem:[%s3498_s4 + $0x18] sm:$0xff] }
 0x2e7   :  { %v1198_v7 = vmul.f32 %v1194_v5, %v1102_v17  ;;  %2203 = vperm.xlu0 %2201, %v2202_v33  }
 0x2e9   :  { %vm1202_vm12 = vcmp.gt.f32.partialorder %v1198_v7, 0.7 }
 0x2ea   :  { %v2135_v3 = vsel %vm1202_vm12, 1.0, %v2286_v60  ;;  %1467 = vmatpush.msrb.mxu3 %v75_v8  ;;  %vm1945_vm12 = vcmask 1043459  }
 0x2eb   :  { %v2208_v37 = vpack.i.bf16 %v2135_v3, %v2134_v45 }
 0x2ec   :  { %1468 = vmatpush.msrb.mxu3 %v74_v46 }
 0x2ed   :  { %2209 = vperm.xlu1 %2207, %v2208_v37  }
 0x2f5   :  { %1415 = vrot.lane.b32.xlu1 %v2963_v6, %s2287_s6 }
 0x359   :  { %v2204_v22 = vpop.permute.xlu0 %2203 }
 0x35a   :  { %v2206_v49 = vunpack.i.h.bf16 %v2204_v22  ;;  %v2205_v9 = vunpack.i.l.bf16 %v2204_v22  ;;  %v73_v22 = vld [vmem:[%s3498_s4 + $0x10] sm:$0xff] }
 0x35b   :  { %1469 = vmatpush.msrb.mxu3 %v73_v22 }
 0x35c   :  { %v1232_v6 = vmul.f32 %v2206_v49, %v2915_v26  ;;  %v1231_v56 = vmul.f32 %v2205_v9, %v2913_v25  ;;  %v1257_v62 = vperm.slane %v2206_v49, %v3187_v12  ;;  %v1255_v16 = vperm.slane %v2205_v9, %v3184_v57  ;;  %v72_v49 = vld [vmem:[%s3498_s4 + $0x8] sm:$0xff] }
 0x35d   :  { %1470 = vmatpush.msrb.mxu3 %v72_v49 }
 0x35e   :  { %v1236_v35 = vsel %vm354_vm0, %v1232_v6, 0.0  ;;  %v1235_v27 = vsel %vm354_vm0, %v1231_v56, 0.0  ;;  %v1259_v5 = vsel %vm3509_vm14, %v1257_v62, %v1255_v16 }
 0x35f   :  { %v1237_v28 = vadd.f32 %v1236_v35, %v1235_v27  ;;  %v2210_v11 = vpop.permute.xlu1 %2209 }
 0x360   :  { %v2212_v58 = vunpack.i.h.bf16 %v2210_v11  ;;  %v2211_v59 = vunpack.i.l.bf16 %v2210_v11 }
 0x362   :  { %v1234_v10 = vmul.f32 %v2212_v58, %v2924_v36  ;;  %v1261_v50 = vperm.slane %v2212_v58, %v3187_v12  ;;  %v1233_v41 = vmul.f32 %v2211_v59, %v2922_v34  ;;  %v1260_v14 = vperm.slane %v2211_v59, %v3184_v57 }
 0x364   :  { %v1245_v63 = vsel %vm354_vm0, %v1234_v10, 0.0  ;;  %v1244_v33 = vsel %vm354_vm0, %v1233_v41, 0.0  ;;  %v1262_v17 = vsel %vm3509_vm14, %v1261_v50, %v1260_v14 }
 0x365   :  { %v1246_v7 = vadd.f32 %v1245_v63, %v1244_v33  ;;  %v1263_v45 = vsel %vm1124_vm4, %v1262_v17, %v1259_v5 }
 0x366   :  { %v1266_v3 = vsel %vm3508_vm15, %v1263_v45, 0.0 }
 0x367   :  { %v1416_v37 = vpop.permute.xlu1 %1415  ;;  %1267 = vadd.xlane.f32.xlu2 %v1266_v3  ;;  %v1247_v9 = vrot.slane %v1246_v7, 4 }
 0x368   :  { %2146 = vmatmul.msk.bf16.vlgmr.msra.gmra.mxu1 %vm1419_vm1, %v1416_v37 }
 0x369   :  { %v1248_v27 = vadd.f32 %v1247_v9, %v1246_v7 }
 0x36b   :  { %v1249_v16 = vrot.slane %v1248_v27, 2 }
 0x36d   :  { %v1250_v14 = vadd.f32 %v1249_v16, %v1248_v27 }
 0x36f   :  { %v1251_v3 = vrot.slane %v1250_v14, 1 }
 0x37f   :  { %1417 = vrot.lane.b32.xlu2 %v3006_v39, %s2287_s6  ;;  %v1238_v39 = vrot.slane %v1237_v28, 4 }
 0x381   :  { %v1239_v56 = vadd.f32 %v1238_v39, %v1237_v28 }
 0x383   :  { %v1240_v62 = vrot.slane %v1239_v56, 2 }
 0x385   :  { %v1241_v10 = vadd.f32 %v1240_v62, %v1239_v56  ;;  %v1252_v62 = vadd.f32 %v1251_v3, %v1250_v14 }
 0x387   :  { %v1242_v5 = vrot.slane %v1241_v10, 1 }
 0x389   :  { %v1243_v49 = vadd.f32 %v1242_v5, %v1241_v10  ;;  %v1305_v10 = vmul.f32 0.5, %v3124_v44 }
 0x3da   :  { %v1268_v6 = vpop.xlane.xlu2 %1267 }
 0x3db   :  { %v1269_v35 = vadd.f32 1e-05, %v1268_v6 }
 0x3dd   :  { %v1271_v11 = vrot.slane %v1269_v35, 1  ;;  %2257 = vrcp.f32 %v1269_v35  ;;  %v1285_v17 = vand.u32 2147483648, %v1269_v35  ;;  %v1283_v7 = vand.u32 2147483647, %v1269_v35 }
 0x3de   :  { %vm1279_vm3 = vweird.f32 %v1269_v35 }
 0x3df   :  { %2259 = vrcp.f32 %v1271_v11  ;;  %v1300_v37 = vand.u32 2147483648, %v1271_v11  ;;  %v1298_v22 = vand.u32 2147483647, %v1271_v11  ;;  %v1286_v39 = vor.u32 1.1754944e-38, %v1285_v17 }
 0x3e0   :  { %vm1284_vm8 = vcmp.eq.f32.partialorder %v1283_v7, 8.507059e+37  ;;  %vm1294_vm9 = vweird.f32 %v1271_v11 }
 0x3e1   :  { %v1301_v27 = vor.u32 1.1754944e-38, %v1300_v37  ;;  %vm1299_vm11 = vcmp.eq.f32.partialorder %v1298_v22, 8.507059e+37 }
 0x3e2   :  { %v1418_v58 = vpop.permute.xlu2 %1417 }
 0x3e3   :  { %v2258_v59 = vpop.eup %2257  ;;  %2147 = vmatmul.msk.bf16.vlgmr.msra.gmra.mxu3 %vm1419_vm1, %v1418_v58  ;;  %vm1961_vm1 = vcmask 1047559  }
 0x3e4   :  { %v1275_v50 = vmul.f32 %v2258_v59, %v1269_v35  ;;  %vm1280_vm2 = vweird.f32 %v2258_v59 }
 0x3e5   :  { %v2260_v41 = vpop.eup %2259  ;;  %vm1281_vm7 = vmor %vm1279_vm3, %vm1280_vm2 }
 0x3e6   :  { %v1276_v63 = vsub.f32 1.0, %v1275_v50  ;;  %v1290_v33 = vmul.f32 %v2260_v41, %v1271_v11  ;;  %vm1295_vm6 = vweird.f32 %v2260_v41  ;;  %v1304_v50 = vmul.f32 0.5, %v3128_v32 }
 0x3e7   :  { %vm1296_vm10 = vmor %vm1294_vm9, %vm1295_vm6 }
 0x3e8   :  { %v1277_v28 = vmul.f32 %v2258_v59, %v1276_v63  ;;  %v1291_v45 = vsub.f32 1.0, %v1290_v33 }
 0x3ea   :  { %v1278_v8 = vadd.f32 %v2258_v59, %v1277_v28  ;;  %v1292_v46 = vmul.f32 %v2260_v41, %v1291_v45 }
 0x3ec   :  { %v1282_v9 = vsel %vm1281_vm7, %v2258_v59, %v1278_v8  ;;  %v1293_v6 = vadd.f32 %v2260_v41, %v1292_v46 }
 0x3ed   :  { %v1287_v56 = vsel %vm1284_vm8, %v1286_v39, %v1282_v9 }
 0x3ee   :  { %v1288_v16 = vmul.f32 %v1287_v56, %v1243_v49  ;;  %v1297_v58 = vsel %vm1296_vm10, %v2260_v41, %v1293_v6 }
 0x3ef   :  { %v1302_v35 = vsel %vm1299_vm11, %v1301_v27, %v1297_v58 }
 0x3f0   :  { %v1306_v63 = vmul.f32 0.5, %v1288_v16  ;;  %v1303_v33 = vmul.f32 %v1302_v35, %v1252_v62  ;;  %v1943_v28 = vrot.slane %v1288_v16, 6 }
 0x3f2   :  { %v1308_v5 = vadd.f32 %v1306_v63, %v1304_v50  ;;  %v1307_v17 = vmul.f32 0.5, %v1303_v33  ;;  %v1944_v59 = vrot.slane %v1303_v33, 5 }
 0x3f4   :  { %v3223_v11 = vperm.slane %v1308_v5, 0  ;;  %v1309_v7 = vadd.f32 %v1307_v17, %v1305_v10  ;;  %v3226_v14 = vsel %vm1945_vm12, %v1944_v59, %v1943_v28  ;;  %v1328_v3 = vmul.f32 %v1308_v5, %v1308_v5 }
 0x3f5   :  { %v1959_v8 = vrot.slane %v1308_v5, 2 }
 0x3f6   :  { %v1313_v41 = vmul.f32 %v3223_v11, %v2915_v26  ;;  %v1312_v32 = vmul.f32 %v3223_v11, %v2913_v25  ;;  %v1451_v45 = vrot.slane %v1309_v7, 7  ;;  %v1329_v44 = vmul.f32 %v1309_v7, %v1309_v7 }
 0x3f7   :  { %v3232_v37 = vperm.slane %v1309_v7, 0  ;;  %v1960_v46 = vrot.slane %v1309_v7, 1 }
 0x3f8   :  { %v1319_v22 = vsel %vm354_vm0, %v1313_v41, 0.0  ;;  %v1316_v49 = vsel %vm354_vm0, %v1312_v32, 0.0  ;;  %v1452_v39 = vsel %vm1124_vm4, %v1451_v45, %v1308_v5  ;;  %v1332_v9 = vrot.slane %v1329_v44, 7 }
 0x3f9   :  { %1320 = vadd.xlane.f32.xlu0 %v1319_v22  ;;  %1317 = vadd.xlane.f32.xlu2 %v1316_v49  ;;  %v3238_v6 = vsel %vm1961_vm1, %v1960_v46, %v1959_v8  ;;  %v1315_v62 = vmul.f32 %v3232_v37, %v2924_v36  ;;  %v1314_v16 = vmul.f32 %v3232_v37, %v2922_v34 }
 0x3fa   :  { %2148 = vmatmul.msk.f32.vlgmr.msrb.gmra.mxu3 %vm354_vm0, %v1452_v39  ;;  %v1333_v56 = vsel %vm1124_vm4, %v1332_v9, %v1328_v3 }
 0x3fb   :  { %v1335_v27 = vsel %vm1127_vm5, %v1333_v56, 0.0  ;;  %v1325_v58 = vsel %vm354_vm0, %v1315_v62, 0.0  ;;  %v1322_v35 = vsel %vm354_vm0, %v1314_v16, 0.0 }
 0x3fc   :  { %1336 = vadd.xlane.f32.xlu1 %v1335_v27 }
 0x401   :  { %1326 = vadd.xlane.f32.xlu2 %v1325_v58 }
 0x404   :  { %1323 = vadd.xlane.f32.xlu1 %v1322_v35 }
 0x466   :  { %v1444_v5 = vpop.f32.mrf.mxu3 }
 0x46c   :  { %v1318_v3 = vpop.xlane.xlu2 %1317  ;;  %v1321_v49 = vpop.xlane.xlu0 %1320 }
 0x46e   :  { %v1446_v44 = vpop.f32.mrf.mxu3 }
 0x46f   :  { %v1337_v50 = vpop.xlane.xlu1 %1336 }
 0x470   :  { %v1338_v63 = vmax.f32 %v1337_v50, 1e-16 }
 0x472   :  { %2261 = vrsqrt.f32 %v1338_v63  ;;  %vm1345_vm3 = vweird.f32 %v1338_v63 }
 0x474   :  { %v1327_v58 = vpop.xlane.xlu2 %1326 }
 0x477   :  { %v1324_v39 = vpop.xlane.xlu1 %1323 }
 0x478   :  { %v2262_v33 = vpop.eup %2261 }
 0x479   :  { %v1340_v10 = vmul.f32 %v2262_v33, %v1338_v63  ;;  %vm1346_vm2 = vweird.f32 %v2262_v33 }
 0x47a   :  { %vm1347_vm6 = vmor %vm1345_vm3, %vm1346_vm2 }
 0x47b   :  { %v1341_v17 = vmul.f32 %v2262_v33, %v1340_v10 }
 0x47d   :  { %v1342_v59 = vmul.f32 0.5, %v1341_v17  ;;  %v1472_v16 = vpop.f32.mrf.mxu3 }
 0x47e   :  { %v1502_v35 = vperm.slane %v1472_v16, 0  ;;  %v1501_v63 = vrot.slane %v1472_v16, 1 }
 0x47f   :  { %v1343_v28 = vsub.f32 1.5, %v1342_v59  ;;  %v2236_v59 = vld [vmem:[%s3498_s4 + $0x3] ss:$0 sm:$0xff] }
 0x480   :  { %v1503_v10 = vperm.slane %v1501_v63, 0 }
 0x481   :  { %v1344_v7 = vmul.f32 %v2262_v33, %v1343_v28 }
 0x483   :  { %v1348_v41 = vsel %vm1347_vm6, %v2262_v33, %v1344_v7  ;;  %v1439_v33 = vpop.f32.mrf.mxu1 }
 0x484   :  { %v3249_v32 = vperm.slane %v1348_v41, 0  ;;  %v3251_v45 = vperm.slane %v1348_v41, 1  ;;  %v2237_v41 = vld [vmem:[%s3498_s4 + $0x4] ss:$0 sm:$0xff] }
 0x486   :  { %v1356_v8 = vmul.f32 %v3251_v45, %v3161_v43  ;;  %v1355_v46 = vmul.f32 %v3249_v32, %v3165_v48  ;;  %v1354_v22 = vmul.f32 %v3249_v32, %v3159_v2  ;;  %v1357_v62 = vmul.f32 %v3251_v45, %v3172_v0 }
 0x488   :  { %v1360_v9 = vmul.f32 %v1356_v8, %v1324_v39  ;;  %v1359_v56 = vmul.f32 %v1355_v46, %v1321_v49  ;;  %v1358_v27 = vmul.f32 %v1354_v22, %v1318_v3  ;;  %v1361_v50 = vmul.f32 %v1357_v62, %v1327_v58 }
 0x48a   :  { %1482 = vperm.xlu1 %2207, %v1359_v56   ;;  %1487 = vperm.xlu2 %2213, %v1360_v9  }
 0x48b   :  { %1477 = vperm.xlu0 %2201, %v1358_v27   ;;  %v1441_v17 = vpop.f32.mrf.mxu1 }
 0x492   :  { %1504 = vrot.lane.b32.xlu1 %v1502_v35, %s2288_s17 }
 0x493   :  { %1492 = vperm.xlu0 %2201, %v1361_v50  }
 0x49a   :  { %1538 = vrot.lane.b32.xlu1 %v1439_v33, %s2288_s17 }
 0x49b   :  { %1506 = vrot.lane.b32.xlu0 %v1503_v10, %s2288_s17 }
 0x49c   :  { %2224 = vset.pattern.permute.xlu0 %v2898_v18 }
 0x4a3   :  { %1540 = vrot.lane.b32.xlu0 %v1441_v17, %s2288_s17 }
 0x4e4   :  { %v1488_v28 = vpop.permute.xlu2 %1487 }
 0x4e5   :  { %v1498_v7 = vmul.f32 %v2236_v59, %v1488_v28 }
 0x4e7   :  { %1522 = vrot.lane.b32.xlu0 %v1498_v7, %s2288_s17 }
 0x4ef   :  { %1556 = vrot.lane.b32.xlu0 %v2237_v41, %s2288_s17 }
 0x4fc   :  { %v1483_v3 = vpop.permute.xlu1 %1482 }
 0x4fd   :  { %v1497_v8 = vmul.f32 %v2236_v59, %v1483_v3  ;;  %v1478_v46 = vpop.permute.xlu0 %1477 }
 0x4fe   :  { %v1496_v22 = vmul.f32 %v2236_v59, %v1478_v46 }
 0x4ff   :  { %1520 = vrot.lane.b32.xlu1 %v1497_v8, %s2288_s17 }
 0x500   :  { %1518 = vrot.lane.b32.xlu2 %v1496_v22, %s2288_s17 }
 0x504   :  { %v1505_v27 = vpop.permute.xlu1 %1504 }
 0x505   :  { %v1493_v49 = vpop.permute.xlu0 %1492  ;;  %v1510_v16 = vadd.f32 %v1505_v27, %v2949_v1  ;;  %v1511_v41 = vadd.f32 %v1505_v27, %v2956_v4 }
 0x506   :  { %v1499_v39 = vmul.f32 %v2236_v59, %v1493_v49 }
 0x507   :  { %1544 = vrot.lane.b32.xlu1 %v1446_v44, %s2288_s17 }
 0x508   :  { %1524 = vrot.lane.b32.xlu2 %v1499_v39, %s2288_s17 }
 0x50c   :  { %v1539_v50 = vpop.permute.xlu1 %1538 }
 0x50d   :  { %v1507_v9 = vpop.permute.xlu0 %1506 }
 0x50f   :  { %1571 = vrot.lane.b32.xlu1 %v3232_v37, %s2288_s17 }
 0x510   :  { %1542 = vrot.lane.b32.xlu2 %v1444_v5, %s2288_s17 }
 0x515   :  { %v1541_v56 = vpop.permute.xlu0 %1540 }
 0x518   :  { %1569 = vrot.lane.b32.xlu2 %v3223_v11, %s2288_s17  ;;  %v1512_v11 = vadd.f32 %v1507_v9, %v2965_v13  ;;  %v1513_v13 = vadd.f32 %v1507_v9, %v2986_v30 }
 0x559   :  { %v1523_v62 = vpop.permute.xlu0 %1522 }
 0x55a   :  { %v1519_v58 = vpop.permute.xlu2 %1518  ;;  %v1532_v5 = vadd.f32 %v1523_v62, %v1512_v11 }
 0x55b   :  { %v1530_v35 = vadd.f32 %v1519_v58, %v1510_v16 }
 0x55d   :  { %v1550_v44 = vadd.f32 %v1539_v50, %v1530_v35 }
 0x561   :  { %v1557_v63 = vpop.permute.xlu0 %1556 }
 0x562   :  { %v1559_v33 = vadd.f32 %v1557_v63, %v1550_v44  ;;  %v1525_v10 = vpop.permute.xlu2 %1524 }
 0x563   :  { %v1533_v39 = vadd.f32 %v1525_v10, %v1513_v13 }
 0x564   :  { %v3284_v17 = vmax.f32 %v1559_v33, 0.0 }
 0x566   :  { %v1607_v37 = vmul.f32 %v3284_v17, %v3284_v17 }
 0x568   :  { %1615 = vrot.lane.b32.xlu0 %v1607_v37, %s2289_s21 }
 0x56a   :  { %v1543_v59 = vpop.permute.xlu2 %1542 }
 0x56b   :  { %v1552_v1 = vadd.f32 %v1543_v59, %v1532_v5 }
 0x56d   :  { %v1561_v28 = vadd.f32 %v1557_v63, %v1552_v1 }
 0x56f   :  { %v3290_v7 = vmax.f32 %v1561_v28, 0.0 }
 0x571   :  { %v1521_v3 = vpop.permute.xlu1 %1520  ;;  %v1609_v8 = vmul.f32 %v3290_v7, %v3290_v7 }
 0x572   :  { %v1531_v46 = vadd.f32 %v1521_v3, %v1511_v41  ;;  %v1570_v16 = vpop.permute.xlu2 %1569 }
 0x573   :  { %1619 = vrot.lane.b32.xlu1 %v1609_v8, %s2289_s21  ;;  %v1575_v9 = vmul.f32 %v1570_v16, %v3284_v17 }
 0x574   :  { %v1551_v22 = vadd.f32 %v1541_v56, %v1531_v46 }
 0x576   :  { %v1560_v49 = vadd.f32 %v1557_v63, %v1551_v22 }
 0x578   :  { %v3297_v62 = vmax.f32 %v1560_v49, 0.0 }
 0x579   :  { %v1545_v58 = vpop.permute.xlu1 %1544 }
 0x57a   :  { %v1576_v35 = vmul.f32 %v1570_v16, %v3297_v62  ;;  %v1553_v50 = vadd.f32 %v1545_v58, %v1533_v39  ;;  %v1608_v4 = vmul.f32 %v3297_v62, %v3297_v62 }
 0x57c   :  { %v1562_v27 = vadd.f32 %v1557_v63, %v1553_v50  ;;  %1617 = vrot.lane.b32.xlu2 %v1608_v4, %s2289_s21  ;;  %1585 = vrot.lane.b32.xlu1 %v1576_v35, %s2289_s21 }
 0x57e   :  { %v3304_v56 = vmax.f32 %v1562_v27, 0.0 }
 0x580   :  { %v1610_v30 = vmul.f32 %v3304_v56, %v3304_v56 }
 0x581   :  { %v1572_v44 = vpop.permute.xlu1 %1571 }
 0x582   :  { %1621 = vrot.lane.b32.xlu0 %v1610_v30, %s2289_s21  ;;  %v1577_v33 = vmul.f32 %v1572_v44, %v3290_v7  ;;  %v1578_v63 = vmul.f32 %v1572_v44, %v3304_v56 }
 0x584   :  { %1583 = vrot.lane.b32.xlu2 %v1575_v9, %s2289_s21 }
 0x58a   :  { %1587 = vrot.lane.b32.xlu0 %v1577_v33, %s2289_s21 }
 0x58c   :  { %1589 = vrot.lane.b32.xlu2 %v1578_v63, %s2289_s21 }
 0x5d6   :  { %v1618_v10 = vpop.permute.xlu2 %1617 }
 0x5d7   :  { %v1630_v37 = vsel %vm354_vm0, %v1618_v10, 0.0 }
 0x5d8   :  { %1631 = vadd.xlane.f32.xlu0 %v1630_v37 }
 0x5da   :  { %v1616_v11 = vpop.permute.xlu0 %1615 }
 0x5db   :  { %v1627_v5 = vsel %vm354_vm0, %v1616_v11, 0.0 }
 0x5dc   :  { %1628 = vadd.xlane.f32.xlu1 %v1627_v5 }
 0x5de   :  { %v1584_v59 = vpop.permute.xlu2 %1583 }
 0x5df   :  { %v1595_v1 = vsel %vm354_vm0, %v1584_v59, 0.0 }
 0x5e0   :  { %1596 = vadd.xlane.f32.xlu0 %v1595_v1 }
 0x5e5   :  { %v1620_v28 = vpop.permute.xlu1 %1619 }
 0x5e6   :  { %v1633_v41 = vsel %vm354_vm0, %v1620_v28, 0.0  ;;  %v1590_v3 = vpop.permute.xlu2 %1589 }
 0x5e7   :  { %1634 = vadd.xlane.f32.xlu2 %v1633_v41  ;;  %v1604_v8 = vsel %vm354_vm0, %v1590_v3, 0.0 }
 0x5e8   :  { %1605 = vadd.xlane.f32.xlu0 %v1604_v8 }
 0x5ee   :  { %v1586_v46 = vpop.permute.xlu1 %1585 }
 0x5ef   :  { %v1598_v22 = vsel %vm354_vm0, %v1586_v46, 0.0 }
 0x5f0   :  { %1599 = vadd.xlane.f32.xlu2 %v1598_v22 }
 0x5f4   :  { %v1622_v13 = vpop.permute.xlu0 %1621 }
 0x5f5   :  { %v1636_v49 = vsel %vm354_vm0, %v1622_v13, 0.0 }
 0x5f6   :  { %1637 = vadd.xlane.f32.xlu1 %v1636_v49 }
 0x5fc   :  { %v1588_v39 = vpop.permute.xlu0 %1587 }
 0x5fd   :  { %v1601_v16 = vsel %vm354_vm0, %v1588_v39, 0.0 }
 0x5fe   :  { %1602 = vadd.xlane.f32.xlu1 %v1601_v16 }
 0x64b   :  { %v1632_v58 = vpop.xlane.xlu0 %1631 }
 0x64c   :  { %v1640_v35 = vmax.f32 %v1632_v58, 1e-16 }
 0x64e   :  { %2263 = vrsqrt.f32 %v1640_v35  ;;  %vm1659_vm8 = vweird.f32 %v1640_v35 }
 0x64f   :  { %v1629_v50 = vpop.xlane.xlu1 %1628 }
 0x650   :  { %v1639_v4 = vmax.f32 %v1629_v50, 1e-16 }
 0x652   :  { %2265 = vrsqrt.f32 %v1639_v4  ;;  %vm1649_vm11 = vweird.f32 %v1639_v4 }
 0x653   :  { %v1597_v58 = vpop.xlane.xlu0 %1596 }
 0x654   :  { %v2264_v27 = vpop.eup %2263 }
 0x655   :  { %v1654_v30 = vmul.f32 %v2264_v27, %v1640_v35  ;;  %vm1660_vm7 = vweird.f32 %v2264_v27 }
 0x656   :  { %vm1661_vm9 = vmor %vm1659_vm8, %vm1660_vm7 }
 0x657   :  { %v1655_v9 = vmul.f32 %v2264_v27, %v1654_v30 }
 0x658   :  { %v2266_v44 = vpop.eup %2265 }
 0x659   :  { %v1656_v33 = vmul.f32 0.5, %v1655_v9  ;;  %v1644_v63 = vmul.f32 %v2266_v44, %v1639_v4  ;;  %vm1650_vm10 = vweird.f32 %v2266_v44 }
 0x65a   :  { %v1635_v10 = vpop.xlane.xlu2 %1634  ;;  %vm1651_vm1 = vmor %vm1649_vm11, %vm1650_vm10 }
 0x65b   :  { %v1657_v37 = vsub.f32 1.5, %v1656_v33  ;;  %v1645_v11 = vmul.f32 %v2266_v44, %v1644_v63  ;;  %v1641_v5 = vmax.f32 %v1635_v10, 1e-16 }
 0x65d   :  { %v1646_v59 = vmul.f32 0.5, %v1645_v11  ;;  %2267 = vrsqrt.f32 %v1641_v5  ;;  %v1658_v1 = vmul.f32 %v2264_v27, %v1657_v37  ;;  %vm1669_vm7 = vweird.f32 %v1641_v5 }
 0x65f   :  { %v1647_v28 = vsub.f32 1.5, %v1646_v59  ;;  %v1662_v41 = vsel %vm1661_vm9, %v2264_v27, %v1658_v1 }
 0x660   :  { %v1684_v8 = vmul.f32 %v1662_v41, %v3249_v32 }
 0x661   :  { %v1648_v3 = vmul.f32 %v2266_v44, %v1647_v28 }
 0x663   :  { %v2268_v46 = vpop.eup %2267  ;;  %v1652_v22 = vsel %vm1651_vm1, %v2266_v44, %v1648_v3  ;;  %v1600_v13 = vpop.xlane.xlu2 %1599 }
 0x664   :  { %v1683_v49 = vmul.f32 %v1652_v22, %v3249_v32  ;;  %v1664_v39 = vmul.f32 %v2268_v46, %v1641_v5  ;;  %v1688_v16 = vmul.f32 %v1684_v8, %v1600_v13  ;;  %vm1670_vm6 = vweird.f32 %v2268_v46 }
 0x665   :  { %vm1671_vm8 = vmor %vm1669_vm7, %vm1670_vm6  ;;  %v913_v8 = vperm.slane %v2929_v53, 0 }
 0x666   :  { %v1687_v35 = vmul.f32 %v1683_v49, %v1597_v58  ;;  %vm1692_vm2 = vcmp.gt.f32.partialorder %v1688_v16, 0.5  ;;  %v1665_v50 = vmul.f32 %v2268_v46, %v1664_v39  ;;  %v1606_v39 = vpop.xlane.xlu0 %1605 }
 0x667   :  { %v2150_v4 = vsel %vm1692_vm2, 1.0, %v2286_v60 }
 0x668   :  { %vm1691_vm3 = vcmp.gt.f32.partialorder %v1687_v35, 0.5  ;;  %v1666_v63 = vmul.f32 0.5, %v1665_v50 }
 0x669   :  { %v2149_v30 = vsel %vm1691_vm3, 1.0, %v2286_v60  ;;  %v1638_v27 = vpop.xlane.xlu1 %1637  ;;  %vm1727_vm3 = vcmask 392320  }
 0x66a   :  { %v2214_v9 = vpack.i.bf16 %v2150_v4, %v2149_v30  ;;  %v1642_v33 = vmax.f32 %v1638_v27, 1e-16  ;;  %v1667_v44 = vsub.f32 1.5, %v1666_v63  ;;  %v939_v30 = vperm.slane %v2929_v53, 2  ;;  %v2238_v4 = vld [vmem:[%s3498_s4 + $0x5] ss:$0 sm:$0xff] }
 0x66c   :  { %2269 = vrsqrt.f32 %v1642_v33  ;;  %2215 = vperm.xlu2 %2213, %v2214_v9   ;;  %v1668_v37 = vmul.f32 %v2268_v46, %v1667_v44  ;;  %vm1679_vm10 = vweird.f32 %v1642_v33 }
 0x66e   :  { %v1672_v1 = vsel %vm1671_vm8, %v2268_v46, %v1668_v37  ;;  %v926_v46 = vperm.slane %v2929_v53, 1 }
 0x66f   :  { %v1685_v3 = vmul.f32 %v1672_v1, %v3251_v45 }
 0x671   :  { %v1603_v41 = vpop.xlane.xlu1 %1602 }
 0x672   :  { %v2270_v10 = vpop.eup %2269  ;;  %v1689_v13 = vmul.f32 %v1685_v3, %v1603_v41 }
 0x673   :  { %v1674_v32 = vmul.f32 %v2270_v10, %v1642_v33  ;;  %vm1680_vm9 = vweird.f32 %v2270_v10 }
 0x674   :  { %2225 = vset.pattern.permute.xlu2 %v2901_v19  ;;  %vm1681_vm11 = vmor %vm1679_vm10, %vm1680_vm9  ;;  %vm1693_vm1 = vcmp.gt.f32.partialorder %v1689_v13, 0.5 }
 0x675   :  { %v1675_v11 = vmul.f32 %v2270_v10, %v1674_v32  ;;  %v2151_v58 = vsel %vm1693_vm1, 1.0, %v2286_v60 }
 0x677   :  { %v1676_v59 = vmul.f32 0.5, %v1675_v11 }
 0x679   :  { %v1677_v28 = vsub.f32 1.5, %v1676_v59 }
 0x67b   :  { %v1678_v22 = vmul.f32 %v2270_v10, %v1677_v28 }
 0x67c   :  { %924 = vperm.xlu2 %2225, %v913_v8  }
 0x67d   :  { %v1682_v49 = vsel %vm1681_vm11, %v2270_v10, %v1678_v22 }
 0x67e   :  { %v1686_v5 = vmul.f32 %v1682_v49, %v3251_v45  ;;  %v952_v45 = vperm.slane %v2929_v53, 3 }
 0x680   :  { %v1690_v16 = vmul.f32 %v1686_v5, %v1606_v39 }
 0x682   :  { %vm1694_vm2 = vcmp.gt.f32.partialorder %v1690_v16, 0.5 }
 0x683   :  { %v2152_v35 = vsel %vm1694_vm2, 1.0, %v2286_v60 }
 0x684   :  { %v2219_v50 = vpack.i.bf16 %v2152_v35, %v2151_v58  ;;  %937 = vperm.xlu2 %2225, %v926_v46  }
 0x686   :  { %2220 = vperm.xlu1 %2207, %v2219_v50  }
 0x68c   :  { %2227 = vset.pattern.permute.xlu2 %v2898_v18 }
 0x68e   :  { %2226 = vset.pattern.permute.xlu1 %v2898_v18 }
 0x694   :  { %944 = vperm.xlu2 %2227, %v939_v30  }
 0x696   :  { %931 = vperm.xlu1 %2226, %v926_v46  }
 0x69c   :  { %957 = vperm.xlu2 %2227, %v952_v45  }
 0x69e   :  { %2228 = vset.pattern.permute.xlu1 %v2901_v19 }
 0x69f   :  { %1856 = vrot.lane.b32.xlu1 %v2238_v4, %s2288_s17 }
 0x6a4   :  { %2229 = vset.pattern.permute.xlu2 %v2901_v19 }
 0x6a7   :  { %950 = vperm.xlu1 %2228, %v939_v30  }
 0x6ac   :  { %963 = vperm.xlu2 %2229, %v952_v45  }
 0x6af   :  { %2230 = vset.pattern.permute.xlu1 %v2285_v51 }
 0x6b4   :  { %2231 = vset.pattern.permute.xlu2 %v2285_v51 }
 0x6c6   :  { %v2216_v18 = vpop.permute.xlu2 %2215 }
 0x6c7   :  { %v2218_v60 = vunpack.i.h.bf16 %v2216_v18  ;;  %v2217_v27 = vunpack.i.l.bf16 %v2216_v18 }
 0x6c9   :  { %v1724_v9 = vmul.f32 %v2218_v60, %v3297_v62  ;;  %v1723_v33 = vmul.f32 %v2217_v27, %v3284_v17  ;;  %v1747_v32 = vperm.slane %v2218_v60, %v3187_v12  ;;  %v1746_v37 = vperm.slane %v2217_v27, %v3184_v57 }
 0x6cb   :  { %v1729_v63 = vsel %vm1727_vm3, %v1724_v9, 0.0  ;;  %v1728_v44 = vsel %vm1727_vm3, %v1723_v33, 0.0  ;;  %v1748_v5 = vsel %vm3509_vm14, %v1747_v32, %v1746_v37 }
 0x6cc   :  { %v1730_v10 = vadd.f32 %v1729_v63, %v1728_v44 }
 0x6d6   :  { %v3354_v1 = vpop.permute.xlu2 %924 }
 0x6de   :  { %v938_v35 = vpop.permute.xlu2 %937 }
 0x6df   :  { %v968_v50 = vmul.f32 %v938_v35, %v415_v38  ;;  %v1731_v38 = vrot.slane %v1730_v10, 4 }
 0x6e1   :  { %v983_v4 = vsel %vm354_vm0, %v968_v50, 0.0 }
 0x6f8   :  { %v2221_v19 = vpop.permute.xlu1 %2220 }
 0x6f9   :  { %v2223_v11 = vunpack.i.h.bf16 %v2221_v19  ;;  %v2222_v59 = vunpack.i.l.bf16 %v2221_v19 }
 0x6fb   :  { %v1726_v28 = vmul.f32 %v2223_v11, %v3304_v56  ;;  %v1750_v41 = vperm.slane %v2223_v11, %v3187_v12  ;;  %v1725_v3 = vmul.f32 %v2222_v59, %v3290_v7  ;;  %v1749_v22 = vperm.slane %v2222_v59, %v3184_v57 }
 0x6fd   :  { %v1738_v13 = vsel %vm1727_vm3, %v1726_v28, 0.0  ;;  %v1737_v49 = vsel %vm1727_vm3, %v1725_v3, 0.0  ;;  %v1751_v39 = vsel %vm3509_vm14, %v1750_v41, %v1749_v22 }
 0x6fe   :  { %v1739_v16 = vadd.f32 %v1738_v13, %v1737_v49  ;;  %v1752_v46 = vsel %vm1124_vm4, %v1751_v39, %v1748_v5 }
 0x6ff   :  { %v1754_v58 = vsel %vm3508_vm15, %v1752_v46, 0.0 }
 0x700   :  { %1755 = vadd.xlane.f32.xlu0 %v1754_v58 }
 0x708   :  { %v932_v30 = vpop.permute.xlu1 %931 }
 0x709   :  { %v967_v45 = vmul.f32 %v932_v30, %v414_v42  ;;  %v1740_v42 = vrot.slane %v1739_v16, 4 }
 0x70b   :  { %v982_v18 = vsel %vm354_vm0, %v967_v45, 0.0  ;;  %v1741_v44 = vadd.f32 %v1740_v42, %v1739_v16 }
 0x70c   :  { %v3372_v60 = vadd.f32 %v983_v4, %v982_v18 }
 0x711   :  { %v1857_v27 = vpop.permute.xlu1 %1856 }
 0x712   :  { %v1859_v9 = vmul.f32 %v1857_v27, %v3284_v17  ;;  %v1860_v33 = vmul.f32 %v1857_v27, %v3297_v62  ;;  %v1861_v29 = vmul.f32 %v1857_v27, %v3290_v7  ;;  %v1862_v31 = vmul.f32 %v1857_v27, %v3304_v56 }
 0x713   :  { %v1732_v62 = vadd.f32 %v1731_v38, %v1730_v10  ;;  %v1742_v7 = vrot.slane %v1741_v44, 2 }
 0x714   :  { %1867 = vrot.lane.b32.xlu1 %v1859_v9, %s2289_s21  ;;  %1869 = vrot.lane.b32.xlu2 %v1860_v33, %s2289_s21 }
 0x715   :  { %918 = vperm.xlu0 %2224, %v913_v8   ;;  %v1733_v8 = vrot.slane %v1732_v62, 2  ;;  %v1743_v11 = vadd.f32 %v1742_v7, %v1741_v44 }
 0x717   :  { %v1734_v19 = vadd.f32 %v1733_v8, %v1732_v62  ;;  %v1744_v13 = vrot.slane %v1743_v11, 1 }
 0x719   :  { %v951_v59 = vpop.permute.xlu1 %950  ;;  %v1745_v4 = vadd.f32 %v1744_v13, %v1743_v11  ;;  %v71_v11 = vld [vmem:[%s3498_s4 + $0x6] sm:$0x1]  ;;  %v3521_v13 = vmax.f32 %v3036_v61, 0.0 }
 0x71a   :  { %2188 = vpush %v71_v11 }
 0x71c   :  { %1871 = vrot.lane.b32.xlu1 %v1861_v29, %s2289_s21  ;;  %1873 = vrot.lane.b32.xlu2 %v1862_v31, %s2289_s21 }
 0x71d   :  { %2232 = vset.pattern.permute.xlu0 %v2285_v51 }
 0x73f   :  { %1010 = vadd.xlane.f32.xlu0 %v2932_v54  ;;  %v1735_v54 = vrot.slane %v1734_v19, 1 }
 0x741   :  { %v1736_v46 = vadd.f32 %v1735_v54, %v1734_v19 }
 0x74b   :  { %s2189_s4 = spop %2188 }
 0x773   :  { %v1756_v17 = vpop.xlane.xlu0 %1755 }
 0x774   :  { %v1757_v63 = vadd.f32 1e-05, %v1756_v17 }
 0x776   :  { %v1759_v53 = vrot.slane %v1757_v63, 1  ;;  %2271 = vrcp.f32 %v1757_v63  ;;  %v1773_v41 = vand.u32 2147483648, %v1757_v63  ;;  %v1771_v10 = vand.u32 2147483647, %v1757_v63 }
 0x777   :  { %vm1767_vm7 = vweird.f32 %v1757_v63 }
 0x778   :  { %2273 = vrcp.f32 %v1759_v53  ;;  %v1788_v49 = vand.u32 2147483648, %v1759_v53  ;;  %v1786_v16 = vand.u32 2147483647, %v1759_v53  ;;  %v1774_v58 = vor.u32 1.1754944e-38, %v1773_v41 }
 0x779   :  { %vm1772_vm10 = vcmp.eq.f32.partialorder %v1771_v10, 8.507059e+37  ;;  %vm1782_vm11 = vweird.f32 %v1759_v53  ;;  %v3519_v10 = vmax.f32 %v3027_v55, 0.0 }
 0x77a   :  { %v1789_v18 = vor.u32 1.1754944e-38, %v1788_v49  ;;  %vm1787_vm2 = vcmp.eq.f32.partialorder %v1786_v16, 8.507059e+37  ;;  %v966_v49 = vmul.f32 %v3354_v1, %v3521_v13  ;;  %v985_v16 = vrot.slane %v3372_v60, 4 }
 0x77c   :  { %v2272_v56 = vpop.eup %2271  ;;  %v974_v55 = vsel %vm354_vm0, %v966_v49, 0.0  ;;  %v986_v61 = vadd.f32 %v985_v16, %v3372_v60 }
 0x77d   :  { %v1763_v32 = vmul.f32 %v2272_v56, %v1757_v63  ;;  %vm1768_vm6 = vweird.f32 %v2272_v56  ;;  %v945_v63 = vpop.permute.xlu2 %944 }
 0x77e   :  { %v2274_v37 = vpop.eup %2273  ;;  %vm1769_vm9 = vmor %vm1767_vm7, %vm1768_vm6 }
 0x77f   :  { %v1764_v51 = vsub.f32 1.0, %v1763_v32  ;;  %v1778_v28 = vmul.f32 %v2274_v37, %v1759_v53  ;;  %vm1783_vm8 = vweird.f32 %v2274_v37 }
 0x780   :  { %vm1784_vm1 = vmor %vm1782_vm11, %vm1783_vm8 }
 0x781   :  { %v1765_v3 = vmul.f32 %v2272_v56, %v1764_v51  ;;  %v1779_v22 = vsub.f32 1.0, %v1778_v28  ;;  %v969_v28 = vmul.f32 %v945_v63, %v416_v47 }
 0x783   :  { %v1766_v5 = vadd.f32 %v2272_v56, %v1765_v3  ;;  %v1780_v39 = vmul.f32 %v2274_v37, %v1779_v22  ;;  %v991_v40 = vsel %vm354_vm0, %v969_v28, 0.0 }
 0x785   :  { %v1770_v35 = vsel %vm1769_vm9, %v2272_v56, %v1766_v5  ;;  %v1781_v50 = vadd.f32 %v2274_v37, %v1780_v39  ;;  %v958_v32 = vpop.permute.xlu2 %957 }
 0x786   :  { %v1868_v30 = vpop.permute.xlu1 %1867  ;;  %v1775_v45 = vsel %vm1772_vm10, %v1774_v58, %v1770_v35 }
 0x787   :  { %v1879_v27 = vsel %vm354_vm0, %v1868_v30, 0.0  ;;  %v1776_v9 = vmul.f32 %v1775_v45, %v1736_v46  ;;  %v1785_v33 = vsel %vm1784_vm1, %v2274_v37, %v1781_v50  ;;  %v970_v37 = vmul.f32 %v951_v59, %v417_v20  ;;  %v919_v54 = vpop.permute.xlu0 %918 }
 0x788   :  { %1880 = vadd.xlane.f32.xlu0 %v1879_v27  ;;  %v1790_v29 = vsel %vm1787_vm2, %v1789_v18, %v1785_v33  ;;  %v965_v22 = vmul.f32 %v919_v54, %v3519_v10  ;;  %v3520_v20 = vmax.f32 %v2974_v23, 0.0  ;;  %v987_v30 = vrot.slane %v986_v61, 2 }
 0x789   :  { %v1792_v31 = vperm.slane %v1776_v9, 0  ;;  %v1791_v38 = vmul.f32 %v1790_v29, %v1745_v4  ;;  %v1818_v44 = vmul.f32 %v1776_v9, %v1776_v9  ;;  %v992_v3 = vsel %vm354_vm0, %v970_v37, 0.0 }
 0x78a   :  { %v971_v59 = vmul.f32 %v958_v32, %v3520_v20  ;;  %v993_v21 = vadd.f32 %v992_v3, %v991_v40  ;;  %v973_v24 = vsel %vm354_vm0, %v965_v22, 0.0  ;;  %v988_v29 = vadd.f32 %v987_v30, %v986_v61 }
 0x78b   :  { %1796 = vrot.lane.b32.xlu1 %v1792_v31, %s2289_s21  ;;  %v1793_v42 = vperm.slane %v1791_v38, 0  ;;  %v1819_v17 = vmul.f32 %v1791_v38, %v1791_v38  ;;  %v1938_v62 = vrot.slane %v1791_v38, 7  ;;  %v975_v23 = vadd.f32 %v974_v55, %v973_v24 }
 0x78c   :  { %v994_v46 = vrot.slane %v993_v21, 4 }
 0x78d   :  { %1798 = vrot.lane.b32.xlu2 %v1793_v42, %s2289_s21  ;;  %v1822_v53 = vrot.slane %v1819_v17, 7  ;;  %v3390_v8 = vsel %vm1124_vm4, %v1938_v62, %v1776_v9  ;;  %v964_v51 = vpop.permute.xlu2 %963  ;;  %v976_v1 = vrot.slane %v975_v23, 4 }
 0x78e   :  { %v1872_v7 = vpop.permute.xlu1 %1871  ;;  %v972_v41 = vmul.f32 %v964_v51, %v419_v15  ;;  %v1000_v15 = vsel %vm354_vm0, %v971_v59, 0.0  ;;  %v995_v35 = vadd.f32 %v994_v46, %v993_v21 }
 0x78f   :  { %v1885_v56 = vsel %vm354_vm0, %v1872_v7, 0.0  ;;  %v1823_v19 = vsel %vm1124_vm4, %v1822_v53, %v1818_v44  ;;  %v977_v18 = vadd.f32 %v976_v1, %v975_v23  ;;  %v989_v44 = vrot.slane %v988_v29, 1 }
 0x790   :  { %1886 = vadd.xlane.f32.xlu0 %v1885_v56  ;;  %v1001_v47 = vsel %vm354_vm0, %v972_v41, 0.0  ;;  %v996_v45 = vrot.slane %v995_v35, 2 }
 0x791   :  { %v1002_v39 = vadd.f32 %v1001_v47, %v1000_v15  ;;  %v978_v42 = vrot.slane %v977_v18, 2  ;;  %v990_v54 = vadd.f32 %v989_v44, %v988_v29 }
 0x792   :  { %v997_v31 = vadd.f32 %v996_v45, %v995_v35 }
 0x793   :  { %1824 = vrot.lane.b32.xlu1 %v1823_v19, %s2289_s21  ;;  %v1003_v58 = vrot.slane %v1002_v39, 4  ;;  %v979_v7 = vadd.f32 %v978_v42, %v977_v18 }
 0x794   :  { %v998_v53 = vrot.slane %v997_v31, 1 }
 0x795   :  { %v1870_v5 = vpop.permute.xlu2 %1869  ;;  %v1004_v50 = vadd.f32 %v1003_v58, %v1002_v39  ;;  %v980_v3 = vrot.slane %v979_v7, 1 }
 0x796   :  { %v1882_v32 = vsel %vm354_vm0, %v1870_v5, 0.0  ;;  %v999_v41 = vadd.f32 %v998_v53, %v997_v31 }
 0x797   :  { %v1005_v33 = vrot.slane %v1004_v50, 2  ;;  %v981_v44 = vadd.f32 %v980_v3, %v979_v7 }
 0x799   :  { %v3422_v63 = vadd.f32 %v1005_v33, %v1004_v50 }
 0x79b   :  { %v1007_v28 = vrot.slane %v3422_v63, 1 }
 0x79d   :  { %v1874_v4 = vpop.permute.xlu2 %1873 }
 0x79e   :  { %v1888_v38 = vsel %vm354_vm0, %v1874_v4, 0.0 }
 0x7b2   :  { %v1011_v27 = vpop.xlane.xlu0 %1010 }
 0x7b3   :  { %v1012_v9 = vadd.f32 1e-05, %v1011_v27 }
 0x7b5   :  { %2275 = vrcp.f32 %v1012_v9  ;;  %v1014_v17 = vrot.slane %v1012_v9, 1  ;;  %v1015_v62 = vrot.slane %v1012_v9, 2  ;;  %v3420_v60 = vrot.slane %v1012_v9, 3 }
 0x7b6   :  { %1889 = vadd.xlane.f32.xlu2 %v1888_v38  ;;  %v1030_v19 = vand.u32 2147483647, %v1012_v9  ;;  %v1032_v11 = vand.u32 2147483648, %v1012_v9  ;;  %vm1026_vm3 = vweird.f32 %v1012_v9 }
 0x7b7   :  { %2277 = vrcp.f32 %v1014_v17  ;;  %vm1041_vm6 = vweird.f32 %v1014_v17  ;;  %v1045_v59 = vand.u32 2147483647, %v1014_v17  ;;  %v1047_v13 = vand.u32 2147483648, %v1014_v17 }
 0x7b8   :  { %2279 = vrcp.f32 %v1015_v62  ;;  %vm3427_vm7 = vcmp.eq.f32.partialorder %v1030_v19, 8.507059e+37  ;;  %v1033_v24 = vor.u32 1.1754944e-38, %v1032_v11  ;;  %vm1056_vm9 = vweird.f32 %v1015_v62 }
 0x7b9   :  { %2281 = vrcp.f32 %v3420_v60  ;;  %v1060_v55 = vand.u32 2147483647, %v1015_v62  ;;  %v1062_v23 = vand.u32 2147483648, %v1015_v62  ;;  %vm3437_vm1 = vcmp.eq.f32.partialorder %v1045_v59, 8.507059e+37 }
 0x7ba   :  { %v1048_v45 = vor.u32 1.1754944e-38, %v1047_v13  ;;  %v1077_v4 = vand.u32 2147483648, %v3420_v60  ;;  %vm1071_vm13 = vweird.f32 %v3420_v60 }
 0x7bb   :  { %v2276_v56 = vpop.eup %2275  ;;  %vm1061_vm14 = vcmp.eq.f32.partialorder %v1060_v55, 8.507059e+37  ;;  %v1063_v29 = vor.u32 1.1754944e-38, %v1062_v23 }
 0x7bc   :  { %v1022_v37 = vmul.f32 %v2276_v56, %v1012_v9  ;;  %vm1027_vm8 = vweird.f32 %v2276_v56  ;;  %v1075_v9 = vand.u32 2147483647, %v3420_v60  ;;  %v1078_v19 = vor.u32 1.1754944e-38, %v1077_v4 }
 0x7bd   :  { %v2278_v51 = vpop.eup %2277  ;;  %1883 = vadd.xlane.f32.xlu1 %v1882_v32  ;;  %vm3433_vm11 = vmor %vm1026_vm3, %vm1027_vm8 }
 0x7be   :  { %v2280_v10 = vpop.eup %2279  ;;  %v1023_v22 = vsub.f32 1.0, %v1022_v37  ;;  %v1037_v40 = vmul.f32 %v2278_v51, %v1014_v17  ;;  %vm1042_vm10 = vweird.f32 %v2278_v51 }
 0x7bf   :  { %v1052_v49 = vmul.f32 %v2280_v10, %v1015_v62  ;;  %v2282_v21 = vpop.eup %2281  ;;  %vm1057_vm2 = vweird.f32 %v2280_v10  ;;  %vm1043_vm15 = vmor %vm1041_vm6, %vm1042_vm10  ;;  %v1008_v62 = vadd.f32 %v1007_v28, %v3422_v63  ;;  %vm1982_vm10 = vcmask 1045504  }
 0x7c0   :  { %v1024_v47 = vmul.f32 %v2276_v56, %v1023_v22  ;;  %v1038_v15 = vsub.f32 1.0, %v1037_v40  ;;  %v1067_v39 = vmul.f32 %v2282_v21, %v3420_v60  ;;  %vm1072_vm3 = vweird.f32 %v2282_v21  ;;  %vm1058_vm8 = vmor %vm1056_vm9, %vm1057_vm2 }
 0x7c1   :  { %v1053_v5 = vsub.f32 1.0, %v1052_v49  ;;  %vm1073_vm6 = vmor %vm1071_vm13, %vm1072_vm3  ;;  %vm1973_vm9 = vcmask 1042434   ;;  %vm3531_vm2 = vcmask 123904  }
 0x7c2   :  { %v1025_v16 = vadd.f32 %v2276_v56, %v1024_v47  ;;  %v1039_v46 = vmul.f32 %v2278_v51, %v1038_v15  ;;  %v1068_v1 = vsub.f32 1.0, %v1067_v39 }
 0x7c3   :  { %v1054_v35 = vmul.f32 %v2280_v10, %v1053_v5 }
 0x7c4   :  { %v1029_v50 = vsel %vm3433_vm11, %v2276_v56, %v1025_v16  ;;  %v1040_v30 = vadd.f32 %v2278_v51, %v1039_v46  ;;  %v1069_v27 = vmul.f32 %v2282_v21, %v1068_v1  ;;  %vm3529_vm11 = vcmask 130112  }
 0x7c5   :  { %v1055_v18 = vadd.f32 %v2280_v10, %v1054_v35  ;;  %v1034_v31 = vsel %vm3427_vm7, %v1033_v24, %v1029_v50  ;;  %v1893_v35 = vstv %s2189_s4  ;;  %vm3528_vm7 = vcmask 1043456  }
 0x7c6   :  { %v1044_v33 = vsel %vm1043_vm15, %v2278_v51, %v1040_v30  ;;  %v1070_v17 = vadd.f32 %v2282_v21, %v1069_v27  ;;  %vm1076_vm15 = vcmp.eq.f32.partialorder %v1075_v9, 8.507059e+37  ;;  %v1035_v11 = vmul.f32 %v1034_v31, %v981_v44 }
 0x7c7   :  { %v1049_v38 = vsel %vm3437_vm1, %v1048_v45, %v1044_v33  ;;  %v1059_v42 = vsel %vm1058_vm8, %v2280_v10, %v1055_v18  ;;  %vm3530_vm1 = vmmov %vm3529_vm11 }
 0x7c8   :  { %v1050_v53 = vmul.f32 %v1049_v38, %v990_v54  ;;  %v1064_v56 = vsel %vm1061_vm14, %v1063_v29, %v1059_v42  ;;  %v1074_v37 = vsel %vm1073_vm6, %v2282_v21, %v1070_v17 }
 0x7c9   :  { %v1065_v32 = vmul.f32 %v1064_v56, %v999_v41  ;;  %v1079_v60 = vsel %vm1076_vm15, %v1078_v19, %v1074_v37 }
 0x7ca   :  { %v1970_v51 = vrot.slane %v1050_v53, 7  ;;  %v1080_v22 = vmul.f32 %v1079_v60, %v1008_v62 }
 0x7cb   :  { %v1972_v40 = vrot.slane %v1065_v32, 6 }
 0x7cc   :  { %v1971_v20 = vsel %vm1124_vm4, %v1970_v51, %v1035_v11  ;;  %v1975_v59 = vrot.slane %v1080_v22, 5 }
 0x7cd   :  { %v1974_v10 = vsel %vm1973_vm9, %v1972_v40, %v1971_v20 }
 0x7ce   :  { %v1976_v7 = vsel %vm1945_vm12, %v1975_v59, %v1974_v10  ;;  %vm1979_vm12 = vcmask 1041408  }
 0x7e7   :  { %v1799_v13 = vpop.permute.xlu2 %1798 }
 0x7e8   :  { %v1804_v49 = vmul.f32 %v1799_v13, %v2922_v34 }
 0x7ea   :  { %v1812_v24 = vsel %vm354_vm0, %v1804_v49, 0.0 }
 0x7fb   :  { %v1881_v34 = vpop.xlane.xlu0 %1880 }
 0x7fc   :  { %v1895_v45 = vadd.f32 %v1893_v35, %v1881_v34 }
 0x7fd   :  { %v1797_v54 = vpop.permute.xlu1 %1796 }
 0x7fe   :  { %v1802_v3 = vmul.f32 %v1797_v54, %v2913_v25  ;;  %v1803_v63 = vmul.f32 %v1797_v54, %v2915_v26  ;;  %v1805_v25 = vmul.f32 %v1799_v13, %v2924_v36  ;;  %v1903_v53 = vmul.f32 0.5, %v1895_v45 }
 0x800   :  { %v1809_v28 = vsel %vm354_vm0, %v1803_v63, 0.0  ;;  %v1806_v41 = vsel %vm354_vm0, %v1802_v3, 0.0  ;;  %v1815_v26 = vsel %vm354_vm0, %v1805_v25, 0.0 }
 0x801   :  { %1810 = vadd.xlane.f32.xlu0 %v1809_v28  ;;  %1807 = vadd.xlane.f32.xlu2 %v1806_v41 }
 0x803   :  { %v1887_v5 = vpop.xlane.xlu0 %1886 }
 0x804   :  { %v1897_v4 = vadd.f32 %v1893_v35, %v1887_v5 }
 0x805   :  { %v1825_v21 = vpop.permute.xlu1 %1824 }
 0x806   :  { %v1827_v47 = vsel %vm1127_vm5, %v1825_v21, 0.0  ;;  %v1905_v56 = vmul.f32 0.5, %v1897_v4 }
 0x807   :  { %1828 = vadd.xlane.f32.xlu1 %v1827_v47 }
 0x809   :  { %1813 = vadd.xlane.f32.xlu0 %v1812_v24 }
 0x811   :  { %1816 = vadd.xlane.f32.xlu0 %v1815_v26 }
 0x819   :  { %1963 = vrot.lane.b32.xlu2 %v3238_v6, %s2288_s17 }
 0x820   :  { %1947 = vrot.lane.b32.xlu1 %v3226_v14, %s2288_s17 }
 0x825   :  { %1956 = vrot.lane.b32.xlu0 %v3137_v52, %s2288_s17 }
 0x829   :  { %v1890_v61 = vpop.xlane.xlu2 %1889 }
 0x82a   :  { %v1898_v51 = vadd.f32 %v1893_v35, %v1890_v61 }
 0x82c   :  { %v1906_v40 = vmul.f32 0.5, %v1898_v51 }
 0x82d   :  { %1977 = vrot.lane.b32.xlu0 %v1976_v7, %s2288_s17 }
 0x830   :  { %v1884_v15 = vpop.xlane.xlu1 %1883 }
 0x831   :  { %v1896_v33 = vadd.f32 %v1893_v35, %v1884_v15 }
 0x833   :  { %v1904_v32 = vmul.f32 0.5, %v1896_v33 }
 0x874   :  { %v1811_v36 = vpop.xlane.xlu0 %1810  ;;  %v1808_v29 = vpop.xlane.xlu2 %1807 }
 0x87a   :  { %v1829_v55 = vpop.xlane.xlu1 %1828 }
 0x87b   :  { %v1830_v39 = vmax.f32 %v1829_v55, 1e-16 }
 0x87c   :  { %v1814_v6 = vpop.xlane.xlu0 %1813  ;;  %v1964_v7 = vpop.permute.xlu2 %1963 }
 0x87d   :  { %2283 = vrsqrt.f32 %v1830_v39  ;;  %vm1837_vm13 = vweird.f32 %v1830_v39 }
 0x883   :  { %v2284_v16 = vpop.eup %2283 }
 0x884   :  { %v1832_v46 = vmul.f32 %v2284_v16, %v1830_v39  ;;  %vm1838_vm5 = vweird.f32 %v2284_v16  ;;  %v1817_v42 = vpop.xlane.xlu0 %1816 }
 0x885   :  { %vm1839_vm14 = vmor %vm1837_vm13, %vm1838_vm5 }
 0x886   :  { %v1833_v23 = vmul.f32 %v2284_v16, %v1832_v46 }
 0x888   :  { %v1834_v58 = vmul.f32 0.5, %v1833_v23 }
 0x88a   :  { %v1835_v14 = vsub.f32 1.5, %v1834_v58 }
 0x88c   :  { %v1836_v52 = vmul.f32 %v2284_v16, %v1835_v14 }
 0x88e   :  { %v1840_v1 = vsel %vm1839_vm14, %v2284_v16, %v1836_v52 }
 0x88f   :  { %v1842_v50 = vperm.slane %v1840_v1, 0  ;;  %v1843_v30 = vperm.slane %v1840_v1, 1 }
 0x891   :  { %v1848_v18 = vmul.f32 %v1843_v30, %v3161_v43  ;;  %v1846_v27 = vmul.f32 %v1842_v50, %v3159_v2  ;;  %v1847_v9 = vmul.f32 %v1842_v50, %v3165_v48  ;;  %v1849_v38 = vmul.f32 %v1843_v30, %v3172_v0 }
 0x892   :  { %v1948_v48 = vpop.permute.xlu1 %1947 }
 0x893   :  { %v1852_v31 = vmul.f32 %v1848_v18, %v1814_v6  ;;  %v1850_v17 = vmul.f32 %v1846_v27, %v1808_v29  ;;  %v1851_v44 = vmul.f32 %v1847_v9, %v1811_v36  ;;  %v1853_v43 = vmul.f32 %v1849_v38, %v1817_v42 }
 0x894   :  { %v1980_v20 = vsel %vm1979_vm12, %v3390_v8, %v1948_v48 }
 0x895   :  { %v1901_v19 = vmul.f32 0.5, %v1852_v31  ;;  %v1899_v62 = vmul.f32 0.5, %v1850_v17  ;;  %v1900_v37 = vmul.f32 0.5, %v1851_v44  ;;  %v1902_v0 = vmul.f32 0.5, %v1853_v43 }
 0x897   :  { %v1909_v11 = vadd.f32 %v1905_v56, %v1901_v19  ;;  %v1907_v60 = vadd.f32 %v1903_v53, %v1899_v62  ;;  %v1908_v2 = vadd.f32 %v1904_v32, %v1900_v37  ;;  %v1957_v22 = vpop.permute.xlu0 %1956  ;;  %v1910_v59 = vadd.f32 %v1906_v40, %v1902_v0 }
 0x898   :  { %v1981_v10 = vsel %vm3528_vm7, %v1980_v20, %v1957_v22 }
 0x899   :  { %1916 = vperm.xlu1 %2230, %v1907_v60   ;;  %1922 = vperm.xlu0 %2232, %v1909_v11   ;;  %v1983_v54 = vsel %vm1982_vm10, %v1981_v10, %v1964_v7 }
 0x89a   :  { %1919 = vperm.xlu2 %2231, %v1908_v2  }
 0x89f   :  { %v1978_v3 = vpop.permute.xlu0 %1977 }
 0x8a1   :  { %1925 = vperm.xlu1 %2230, %v1910_v59  }
 0x8a2   :  { %1985 = vrot.lane.b32.xlu2 %v1983_v54, %s2289_s21 }
 0x8a9   :  { %1987 = vrot.lane.b32.xlu1 %v1978_v3, %s2289_s21 }
 0x8f4   :  { %v1920_v63 = vpop.permute.xlu2 %1919 }
 0x8f5   :  { %v1928_v21 = vperm.slane %v1920_v63, %v3187_v12 }
 0x8fc   :  { %v1986_v28 = vpop.permute.xlu2 %1985 }
 0x8fd   :  { %1991 = vst.msk [vmem:[%s3503_s5] sm:$0xff] %vm354_vm0, %v1986_v28  ;;  %vm1992_vm0 = vcmask 257024  }
 0x90b   :  { %v1917_v8 = vpop.permute.xlu1 %1916  ;;  %v1923_v41 = vpop.permute.xlu0 %1922 }
 0x90c   :  { %v1927_v13 = vperm.slane %v1917_v8, %v3184_v57  ;;  %v1930_v47 = vperm.slane %v1923_v41, %v3184_v57 }
 0x90e   :  { %v1929_v25 = vsel %vm3529_vm11, %v1928_v21, %v1927_v13 }
 0x913   :  { %v1926_v49 = vpop.permute.xlu1 %1925 }
 0x914   :  { %v1931_v24 = vperm.slane %v1926_v49, %v3187_v12 }
 0x916   :  { %v1932_v26 = vsel %vm3530_vm1, %v1931_v24, %v1930_v47 }
 0x917   :  { %v1933_v34 = vsel %vm1124_vm4, %v1932_v26, %v1929_v25 }
 0x918   :  { %1935 = vst.msk [vmem:[%s3504_s7] sm:$0x3] %vm3531_vm2, %v1933_v34 }
 0x91b   :  { %v1988_v15 = vpop.permute.xlu1 %1987 }
 0x91c   :  { %1993 = vst.msk [vmem:[%s3503_s5 + $0x8] sm:$0xf] %vm1992_vm0, %v1988_v15 }

</bundles_post_ra>
